<compile_context>
chip_gen: v6e
topology: v6e:2x2x1
jax: 0.10.0
libtpu: 0.0.40
codegen_flags: <defaults>
</compile_context>

<pallas_src>
import jax
import jax.numpy as jnp
from jax.experimental import pallas as pl
from jax.experimental.pallas import tpu as pltpu


def _early_fusion_kernel(x1_ref, x2_ref, wa_ref, wb_ref, b_ref, o_ref):
    """One packed row-tile of the fused (fc2 o fc1) head.

    x1_ref, x2_ref : (TM4, 128)  PACK consecutive timesteps packed per row
    wa_ref, wb_ref : (128, PACK) block-diagonal folded weights (x1 / x2 halves)
    b_ref          : (1,)        folded bias scalar (SMEM)
    o_ref          : (TM4, PACK) output; element (r, q) is timestep r*PACK + q
    """
    # Full-K (128) MXU matmuls; no transposes, no cross-lane reductions.
    ya = jnp.dot(x1_ref[...], wa_ref[...], preferred_element_type=jnp.float32)
    yb = jnp.dot(x2_ref[...], wb_ref[...], preferred_element_type=jnp.float32)
    o_ref[...] = (ya + yb + b_ref[0]).astype(o_ref.dtype)


def early_fusion_forward(x1, x2, w1, b1, w2, b2, *,
                         tm4_max=2048,          # packed rows/tile -> 8192 orig rows
                         min_pallas_rows=4096,  # below this, XLA wins
                         force_pallas=False):
    """Early fusion head.

    x1, x2 : (B, T, H) float32 backbone features
    w1     : (2H, H)   fc1 weight, already transposed for x @ w1
    b1     : (H,)
    w2     : (H, 1)    fc2 weight, already transposed
    b2     : (1,)
    returns torch-equivalent of fc2(fc1(cat(x1, x2, dim=2))).squeeze()
    """
    B, T, H = x1.shape
    M = B * T

    # Algebraic fold of fc2 into fc1 (no activation between them):
    #   (x @ w1 + b1) @ w2 + b2 == x @ (w1 @ w2) + (b1 @ w2 + b2)
    w_eff = (w1 @ w2).astype(jnp.float32).reshape(2 * H)
    wa = w_eff[:H]                                   # x1 half of folded weight
    wb = w_eff[H:]                                   # x2 half
    b_eff = (b1 @ w2 + b2).reshape(1).astype(jnp.float32)

    x1f = x1.reshape(M, H).astype(jnp.float32)
    x2f = x2.reshape(M, H).astype(jnp.float32)

    def xla_head(a, b):
        # Tiny inputs / tail rows: a (n,H) matvec, let XLA handle it.
        return a @ wa + b @ wb + b_eff[0]

    pallas_ok = (H <= 128) and (128 % H == 0)
    if (not pallas_ok) or (M < min_pallas_rows and not force_pallas):
        # TODO(synk): hidden sizes that do not divide 128 use the XLA path.
        y = xla_head(x1f, x2f)
        return jnp.squeeze(y.reshape(B, T, 1))

    pack = 128 // H                 # timesteps packed per 128-lane row (4 for H=32)
    m4_total = M // pack            # packed rows available

    # --- row-tile selection on the packed (., 128) view ----------------------
    # tm4_max=2048 packed rows = 8192 original rows: 2 inputs x 2 buffers x
    # 1 MiB + ~2 MiB lane-padded output buffers + weights ~= 6 MiB VMEM, under
    # every generation's default scoped limit, and >= 2 MiB useful DMA/step.
    if m4_total >= 2 * tm4_max:
        tm4 = tm4_max
    elif m4_total >= 16:
        # Split into two blocks so v7x's two TensorCores both get work.
        tm4 = max(8, (m4_total // 2) // 8 * 8)
    else:
        tm4 = m4_total              # single block == full (tiny) packed array
    grid = m4_total // tm4
    m4_main = grid * tm4
    m_main = m4_main * pack         # rows handled by the kernel (no padding)

    # Block-diagonal folded weights: column q applies wa/wb to packed slot q.
    eye = jnp.eye(pack, dtype=jnp.float32)
    wa_blk = (eye[:, None, :] * wa[None, :, None]).reshape(pack * H, pack)
    wb_blk = (eye[:, None, :] * wb[None, :, None]).reshape(pack * H, pack)

    # Free, contiguous reshape to the lane-dense packed view (no HBM copy).
    x1p = x1f[:m_main].reshape(m4_main, 128)
    x2p = x2f[:m_main].reshape(m4_main, 128)

    cost = pl.CostEstimate(
        flops=4 * m_main * 128,                      # two (tm4,128)@(128,pack) per step
        transcendentals=0,
        bytes_accessed=(2 * m_main * H + m_main) * 4)

    y_main = pl.pallas_call(
        _early_fusion_kernel,
        out_shape=jax.ShapeDtypeStruct((m4_main, pack), jnp.float32),
        grid=(grid,),
        in_specs=[
            pl.BlockSpec((tm4, 128), lambda i: (i, 0)),          # x1 packed tile
            pl.BlockSpec((tm4, 128), lambda i: (i, 0)),          # x2 packed tile
            pl.BlockSpec((128, pack), lambda i: (0, 0)),         # wa block (resident)
            pl.BlockSpec((128, pack), lambda i: (0, 0)),         # wb block (resident)
            pl.BlockSpec(memory_space=pltpu.MemorySpace.SMEM),   # folded bias scalar
        ],
        out_specs=pl.BlockSpec((tm4, pack), lambda i: (i, 0)),
        compiler_params=pltpu.CompilerParams(
            dimension_semantics=("parallel",)),
        cost_estimate=cost,
    )(x1p, x2p, wa_blk, wb_blk, b_eff)

    y = y_main.reshape(m_main)
    if m_main < M:
        # Tail rows (< one tile, plus any remainder of the PACK grouping) in XLA.
        y_tail = xla_head(x1f[m_main:], x2f[m_main:])
        y = jnp.concatenate([y, y_tail], axis=0)

    y = y.reshape(B, T, 1)
    # torch's .squeeze() drops ALL size-1 dims (so B==1 or T==1 also collapse).
    return jnp.squeeze(y)


def _reference(x1, x2, w1, b1, w2, b2):
    x = jnp.concatenate([x1, x2], axis=2)
    h = jnp.einsum("btf,fh->bth", x, w1) + b1
    y = jnp.einsum("bth,ho->bto", h, w2) + b2
    return jnp.squeeze(y)


if __name__ == "__main__":
    key = jax.random.PRNGKey(0)
    keys = jax.random.split(key, 8)

    H = 32                                    # opts.rnn_hid_size
    bound1 = 1.0 / jnp.sqrt(2.0 * H)
    w1 = jax.random.uniform(keys[0], (2 * H, H), jnp.float32, -bound1, bound1)
    b1 = jax.random.uniform(keys[1], (H,), jnp.float32, -bound1, bound1)
    bound2 = 1.0 / jnp.sqrt(1.0 * H)
    w2 = jax.random.uniform(keys[2], (H, 1), jnp.float32, -bound2, bound2)
    b2 = jax.random.uniform(keys[3], (1,), jnp.float32, -bound2, bound2)

    # --- Case 1: nominal module shapes (B=2, T=8) -> small-size XLA path ----
    B1, T1 = 2, 8
    x1a = jax.random.normal(keys[4], (B1, T1, H), dtype=jnp.float32)
    x2a = jax.random.normal(keys[5], (B1, T1, H), dtype=jnp.float32)
    out_a = jax.block_until_ready(early_fusion_forward(x1a, x2a, w1, b1, w2, b2))
    ref_a = _reference(x1a, x2a, w1, b1, w2, b2)
    assert out_a.shape == (B1, T1), out_a.shape
    assert jnp.allclose(out_a, ref_a, atol=5e-5, rtol=1e-5), (
        f"max abs err {jnp.max(jnp.abs(out_a - ref_a))}")

    # --- Case 2: longer sequence -> Pallas path (grid=2 blocks + XLA tail) --
    B2, T2 = 2, 4104                          # M = 8208 rows, ~1 MiB per input
    x1b = jax.random.normal(keys[6], (B2, T2, H), dtype=jnp.float32)
    x2b = jax.random.normal(keys[7], (B2, T2, H), dtype=jnp.float32)
    out_b = jax.block_until_ready(early_fusion_forward(x1b, x2b, w1, b1, w2, b2))
    ref_b = _reference(x1b, x2b, w1, b1, w2, b2)
    assert out_b.shape == (B2, T2), out_b.shape
    assert jnp.allclose(out_b, ref_b, atol=5e-5, rtol=1e-5), (
        f"max abs err {jnp.max(jnp.abs(out_b - ref_b))}")

    print("KERNEL_OK")
</pallas_src>

<mosaic_0001>
module attributes {stable_mosaic.version = 11 : i64} {
  func.func @_early_fusion_kernel(%arg0: i32, %arg1: memref<1024x128xf32, #tpu.memory_space<vmem>>, %arg2: memref<1024x128xf32, #tpu.memory_space<vmem>>, %arg3: memref<128x4xf32, #tpu.memory_space<vmem>>, %arg4: memref<128x4xf32, #tpu.memory_space<vmem>>, %arg5: memref<1xf32, #tpu.memory_space<smem>>, %arg6: memref<1024x4xf32, #tpu.memory_space<vmem>>) attributes {dimension_semantics = [#tpu.dimension_semantics<parallel>], iteration_bounds = array<i64: 2>, scalar_prefetch = 0 : i64, scratch_operands = 0 : i64, tpu.core_type = #tpu.core_type<tc>, window_params = [{transform_indices = @transform_0, window_bounds = array<i64: 1024, 128>}, {transform_indices = @transform_1, window_bounds = array<i64: 1024, 128>}, {pipeline_mode = #tpu.pipeline_mode<synchronous>, transform_indices = @transform_2, window_bounds = array<i64: 128, 4>}, {pipeline_mode = #tpu.pipeline_mode<synchronous>, transform_indices = @transform_3, window_bounds = array<i64: 128, 4>}, {transform_indices = @transform_4, window_bounds = array<i64: 1>}, {transform_indices = @transform_5, window_bounds = array<i64: 1024, 4>}]} {
    %c0 = arith.constant 0 : index
    %c0_0 = arith.constant 0 : index
    %0 = vector.load %arg1[%c0, %c0_0] : memref<1024x128xf32, #tpu.memory_space<vmem>>, vector<1024x128xf32>
    %c0_1 = arith.constant 0 : index
    %c0_2 = arith.constant 0 : index
    %1 = vector.load %arg3[%c0_1, %c0_2] : memref<128x4xf32, #tpu.memory_space<vmem>>, vector<128x4xf32>
    %cst = arith.constant dense<0.000000e+00> : vector<1024x4xf32>
    %2 = tpu.matmul %0, %1, %cst {dimension_numbers = #tpu.dot_dimension_numbers<[1], [0], [0], [1], [0, 0, 1, 1], [], []>} : vector<1024x128xf32>, vector<128x4xf32>, vector<1024x4xf32> -> vector<1024x4xf32>
    %c0_3 = arith.constant 0 : index
    %c0_4 = arith.constant 0 : index
    %3 = vector.load %arg2[%c0_3, %c0_4] : memref<1024x128xf32, #tpu.memory_space<vmem>>, vector<1024x128xf32>
    %c0_5 = arith.constant 0 : index
    %c0_6 = arith.constant 0 : index
    %4 = vector.load %arg4[%c0_5, %c0_6] : memref<128x4xf32, #tpu.memory_space<vmem>>, vector<128x4xf32>
    %cst_7 = arith.constant dense<0.000000e+00> : vector<1024x4xf32>
    %5 = tpu.matmul %3, %4, %cst_7 {dimension_numbers = #tpu.dot_dimension_numbers<[1], [0], [0], [1], [0, 0, 1, 1], [], []>} : vector<1024x128xf32>, vector<128x4xf32>, vector<1024x4xf32> -> vector<1024x4xf32>
    %6 = arith.addf %2, %5 : vector<1024x4xf32>
    %c0_8 = arith.constant 0 : index
    %7 = memref.load %arg5[%c0_8] : memref<1xf32, #tpu.memory_space<smem>>
    %8 = vector.broadcast %7 : f32 to vector<1024x4xf32>
    %9 = arith.addf %6, %8 : vector<1024x4xf32>
    %c0_9 = arith.constant 0 : index
    %c0_10 = arith.constant 0 : index
    %10 = vector.load %arg6[%c0_9, %c0_10] : memref<1024x4xf32, #tpu.memory_space<vmem>>, vector<1024x4xf32>
    tpu.vector_store %arg6[%c0_9, %c0_10], %9 {strides = array<i32>} : memref<1024x4xf32, #tpu.memory_space<vmem>>, vector<1024x4xf32>,
    return
  }
  func.func @transform_0(%arg0: i32) -> (i32, i32) {
    %c0_i32 = arith.constant 0 : i32
    %c0_i32_0 = arith.constant 0 : i32
    return %arg0, %c0_i32 : i32, i32
  }
  func.func @transform_1(%arg0: i32) -> (i32, i32) {
    %c0_i32 = arith.constant 0 : i32
    %c0_i32_0 = arith.constant 0 : i32
    return %arg0, %c0_i32 : i32, i32
  }
  func.func @transform_2(%arg0: i32) -> (i32, i32) {
    %c0_i32 = arith.constant 0 : i32
    %c0_i32_0 = arith.constant 0 : i32
    %c0_i32_1 = arith.constant 0 : i32
    return %c0_i32, %c0_i32_0 : i32, i32
  }
  func.func @transform_3(%arg0: i32) -> (i32, i32) {
    %c0_i32 = arith.constant 0 : i32
    %c0_i32_0 = arith.constant 0 : i32
    %c0_i32_1 = arith.constant 0 : i32
    return %c0_i32, %c0_i32_0 : i32, i32
  }
  func.func @transform_4(%arg0: i32) -> i32 {
    %c0_i32 = arith.constant 0 : i32
    %c0_i32_0 = arith.constant 0 : i32
    return %c0_i32 : i32
  }
  func.func @transform_5(%arg0: i32) -> (i32, i32) {
    %c0_i32 = arith.constant 0 : i32
    %c0_i32_0 = arith.constant 0 : i32
    return %arg0, %c0_i32 : i32, i32
  }
}

</mosaic_0001>

<bundles_post_ra>
// kernel: tpu_custom_call.1
= control target key start
LH: loop header
LB: loop body
LE: loop exit
PB: predicated region body
PF: predicated region fallthrough
CT: control target
= control target key end

     0   :  { %s4177_s0 = inlined_call_operand.hbm [shape: f32[2048,128], index: 0, kind: input, shape index: {}]   ;;  %s4178_s1 = inlined_call_operand.hbm [shape: f32[2048,128], index: 1, kind: input, shape index: {}]   ;;  %s4179_s2 = inlined_call_operand.vmem [shape: f32[128,4], index: 2, kind: input, shape index: {}]   ;;  %s4180_s3 = inlined_call_operand.vmem [shape: f32[128,4], index: 3, kind: input, shape index: {}]   ;;  %s4181_s4 = inlined_call_operand.<no memory space> [shape: f32[1], index: 4, kind: input, shape index: {}]   ;;  %s4182_s5 = inlined_call_operand.vmem [shape: f32[2048,4], index: 5, kind: output, shape index: {}]  }
   0x1   :  { %10 = sst [smem:[#allocation2]] %s4181_s4 }
   0x2   :  { %11 = vsyncpa [#allocation4], 0 }
   0x3   :  { %13 = vsyncpa [#allocation4 + $0x1], 0 }
   0x4   :  { %14 = vsyncpa [#allocation6], 0 }
   0x5   :  { %16 = vsyncpa [#allocation6 + $0x1], 0  ;;  %s3270_s20 = smov 0   ;;  %s3272_s21 = smov 0  }
   0x6   :  { %s3274_s22 = smov 0   ;;  %s3276_s23 = smov 0  }
   0x7 LB: > { %s2336_s4 = sadd.s32 4294967295, %s3231_s23   ;;  %s3290_s24 = sadd.s32 1, %s3231_s23   ;;  %s3231_s23 = sphi %s3276_s23, %s4192_s23   ;;  %s3227_s22 = sphi %s3274_s22, %s4191_s22   ;;  %s3223_s21 = sphi %s3272_s21, %s4190_s21   ;;  %s3219_s20 = sphi %s3270_s20, %s4189_s20  }
   0x8   : > { %s26_s25 = ssub.s32 %s3231_s23, %s3290_s24  ;;  %s29_s26 = sadd.s32 1, %s3227_s22 }
   0x9   : > { %p27_p0 = scmp.eq.s32.totalorder %s26_s25, 0  ;;  %p36_p1 = scmp.ne.s32.totalorder %s3227_s22, %s3223_s21 }
   0xa   : > { %p37_p2 = scmp.eq.s32.totalorder %s3231_s23, 0  ;;  %p42_p3 = scmp.ne.s32.totalorder %s3223_s21, %s3219_s20 }
   0xb   : > { %s3300_s27 = scalar_select %p27_p0, %s3227_s22, %s29_s26  }
   0xc   : > { %p38_p4 = por %p37_p2, %p36_p1  ;;  %p43_p5 = scmp.eq.s32.totalorder %s2336_s4, 0 }
   0xd   : > { %p3102_p6 = scmp.lt.s32.totalorder %s3231_s23, 2  ;;  %s3310_s29 = sand.u32 1, %s3227_s22  }
   0xe   : > { %p3305_p7 = por %p43_p5, %p42_p3  ;;  %s2340_s30 = sshll.u32 %s3310_s29, 10 }
   0xf   : > { %s2353_s6 = sshll.u32 %s3231_s23, 14  ;;  %s194_s10 = scalar_lea.vmem [#allocation3], %s2340_s30 }
  0x10   : > { %s4184_s28 = scalar_select %p3305_p7, 1, 0 }
  0x11   : > { %s3319_s9 = scalar_lea.hbm %s4177_s0, %s2353_s6  ;;  %s201_s11 = sshll.u32 %s194_s10, 4  ;;  %s3323_s11 = int_to_ptr.vmem [resolvable:$true] %s201_s11 }
  0x12   : > { %p3325_p8 = pnand %p3102_p6, %p38_p4  ;;  %s191_s13 = scalar_lea.sflag [#allocation4], %s3310_s29 }
  0x13   : > { %s3137_s14 = scalar_lea.hbm %s3319_s9, 16384  ;;  %s3142_s17 = scalar_lea.hbm %s4177_s0, 32768 }
  0x14   : > { %p3138_p10 = scmp.ne.s32.totalorder %s3319_s9, %s3137_s14  ;;  %p3139_p11 = pneg %p3325_p8 }
  0x15   : > { %p3143_p0 = scmp.lt.s32.totalorder %s3319_s9, %s4177_s0  ;;  %p3144_p1 = scmp.lt.s32.totalorder %s3142_s17, %s3137_s14 }
  0x16   : > { %p3140_p12 = pnand %p3139_p11, %p3138_p10 }
  0x17   : > { %p3145_p2 = por %p3144_p1, %p3143_p0 }
  0x18   : > { %p3141_p13 = pneg %p3140_p12 }
  0x1a   : > { %p3146_p3 = pnand %p3145_p2, %p3141_p13 }
  0x1c   : > { %3149 = shalt.err (!%p3146_p3)
}
  0x1d   : > { %s3150_s20 = scalar_lea.vmem %s3323_s11, 16384  ;;  %s3233_s25 = smov [#allocation3]  }
  0x1e   : > { %p3151_p4 = scmp.ne.s32.totalorder %s3323_s11, %s3150_s20  ;;  %s3155_s26 = sshll.u32 %s3233_s25, 4  ;;  %s3156_s26 = int_to_ptr.vmem [resolvable:$false] %s3155_s26 }
  0x1f   : > { %s3157_s7 = scalar_lea.vmem %s3156_s26, 32768  ;;  %p3158_p10 = scmp.lt.s32.totalorder %s3323_s11, %s3156_s26 }
  0x20   : > { %p3153_p5 = pnand %p3151_p4, %p3139_p11  ;;  %p3159_p12 = scmp.lt.s32.totalorder %s3157_s7, %s3150_s20 }
  0x22   : > { %p3154_p6 = pneg %p3153_p5  ;;  %p3160_p9 = por %p3159_p12, %p3158_p10 }
  0x24   : > { %p3161_p0 = pnand %p3160_p9, %p3154_p6 }
  0x26   : > { %3164 = shalt.err (!%p3161_p0)
}
  0x27   : > { %s3234_s8 = smov 128   ;;  %s3235_s10 = smov 8  }
  0x28   : > { %3098 = dma.hbm_to_vmem [thread:$0]  (!%p3325_p8), %s3319_s9, 16384, %s3323_s11, %s191_s13, %s3234_s8, %s3234_s8, %s3235_s10  }
  0x29   : > { %p230_p9 = scmp.lt.s32.totalorder %s3231_s23, 3  ;;  %s3366_s16 = scalar_lea.hbm %s4178_s1, %s2353_s6 }
  0x2a   : > { %p4186_p13 = scmp.ge.s32.totalorder %s3231_s23, 1  ;;  %s215_s18 = scalar_lea.vmem [#allocation5], %s2340_s30 }
  0x2b   : > { %s222_s19 = sshll.u32 %s215_s18, 4  ;;  %s212_s9 = scalar_lea.sflag [#allocation6], %s3310_s29  ;;  %s3376_s19 = int_to_ptr.vmem [resolvable:$true] %s222_s19 }
  0x2c   : > { %p3370_p1 = pnand %p4186_p13, %p230_p9  ;;  %s3165_s11 = scalar_lea.hbm %s3366_s16, 16384 }
  0x2d   : > { %p3166_p2 = scmp.ne.s32.totalorder %s3366_s16, %s3165_s11  ;;  %s3170_s20 = scalar_lea.hbm %s4178_s1, 32768 }
  0x2e   : > { %p3171_p5 = scmp.lt.s32.totalorder %s3366_s16, %s4178_s1  ;;  %p3172_p6 = scmp.lt.s32.totalorder %s3170_s20, %s3165_s11 }
  0x2f   : > { %p3168_p3 = pnand %p3166_p2, %p3139_p11 }
  0x30   : > { %p3173_p10 = por %p3172_p6, %p3171_p5 }
  0x31   : > { %p3169_p4 = pneg %p3168_p3 }
  0x33   : > { %p3174_p12 = pnand %p3173_p10, %p3169_p4 }
  0x35   : > { %3177 = shalt.err (!%p3174_p12)
}
  0x36   : > { %s3178_s29 = scalar_lea.vmem %s3376_s19, 16384  ;;  %s3236_s30 = smov [#allocation5]  }
  0x37   : > { %p3179_p0 = scmp.ne.s32.totalorder %s3376_s19, %s3178_s29  ;;  %s3183_s7 = sshll.u32 %s3236_s30, 4  ;;  %s3184_s7 = int_to_ptr.vmem [resolvable:$false] %s3183_s7 }
  0x38   : > { %s3185_s14 = scalar_lea.vmem %s3184_s7, 32768  ;;  %p3186_p2 = scmp.lt.s32.totalorder %s3376_s19, %s3184_s7 }
  0x39   : > { %p3181_p9 = pnand %p3179_p0, %p3139_p11  ;;  %p3187_p3 = scmp.lt.s32.totalorder %s3185_s14, %s3178_s29 }
  0x3b   : > { %p3182_p13 = pneg %p3181_p9  ;;  %p3188_p7 = por %p3187_p3, %p3186_p2 }
  0x3d   : > { %p3189_p5 = pnand %p3188_p7, %p3182_p13 }
  0x3f   : > { %3192 = shalt.err (!%p3189_p5)
}
  0x40   : > { %3101 = dma.hbm_to_vmem [thread:$0]  (!%p3325_p8), %s3366_s16, 16384, %s3376_s19, %s212_s9, %s3234_s8, %s3234_s8, %s3235_s10  }
  0x41   : > { %234 = sbr.rel (%p3370_p1) target bundleno = 560 (0x230), region = 40  ;;  %s236_s15 = sand.u32 (!%p3370_p1), 1, %s3223_s21  }
  0x42   : > { %s2347_s18 = sshll.u32 (!%p3370_p1), %s236_s15, 10  ;;  %s237_s11 = scalar_lea.sflag (!%p3370_p1), [#allocation4], %s236_s15 }
  0x43   : > { %s3407_s6 = scalar_lea.vmem (!%p3370_p1), [#allocation3], %s2347_s18  ;;  %p4188_p7 = scmp.ne.s32.totalorder (!%p3370_p1), %s4184_s28, 0 }
  0x46   : > { %3210 = dma.done.wait (%p4188_p7), %s237_s11, 16384  }
  0x47   : > { %3212 = vsyncadd (%p4188_p7), %s237_s11, 4294950912  ;;  %s246_s12 = scalar_lea.sflag [#allocation6], %s236_s15  ;;  %s3413_s13 = scalar_lea.vmem [#allocation5], %s2347_s18 }
  0x48   : > { %3214 = dma.done.wait (%p4188_p7), %s246_s12, 16384  }
  0x49   : > { %3216 = vsyncadd (%p4188_p7), %s246_s12, 4294950912  ;;  %v576_v0 = vld [vmem:[%s4180_s3 + $0x78] sm:$0xff]  ;;  %v575_v2 = vld [vmem:[%s4180_s3 + $0x70] sm:$0xff]  ;;  %s2349_s29 = sshll.u32 %s2336_s4, 7  ;;  %s1987_s30 = sld [smem:[#allocation2]]  ;;  %vm2117_vm0 = vcmask 31744  }
  0x4a   : > { %v432_v1 = vld [vmem:[%s4179_s2 + $0x78] sm:$0xff]  ;;  %2643 = vmatprep.subr.mxu0 %v576_v0  ;;  %v431_v3 = vld [vmem:[%s4179_s2 + $0x70] sm:$0xff]  ;;  %v574_v4 = vld [vmem:[%s4180_s3 + $0x68] sm:$0xff]  ;;  %p284_p8 = scmp.lt.s32.totalorder %s2349_s29, 255 }
  0x4b   : > { %2867 = vmatprep.subr.mxu1 %v432_v1  ;;  %2644 = vmatpush3.msra.mxu0 %v576_v0  ;;  %v430_v5 = vld [vmem:[%s4179_s2 + $0x68] sm:$0xff]  ;;  %v573_v6 = vld [vmem:[%s4180_s3 + $0x60] sm:$0xff]  ;;  %v572_v8 = vld [vmem:[%s4180_s3 + $0x58] sm:$0xff] }
  0x4c   : > { %2868 = vmatpush3.msra.mxu1 %v432_v1  ;;  %2645 = vmatprep.subr.mxu0 %v575_v2  ;;  %v429_v7 = vld [vmem:[%s4179_s2 + $0x60] sm:$0xff]  ;;  %v428_v9 = vld [vmem:[%s4179_s2 + $0x58] sm:$0xff]  ;;  %v571_v10 = vld [vmem:[%s4180_s3 + $0x50] sm:$0xff]  ;;  %s4194_s29 = smov (!%p284_p8, %s2349_s29), 255 }
  0x4d   : > { %2869 = vmatprep.subr.mxu1 %v431_v3  ;;  %2646 = vmatpush3.msra.mxu0 %v575_v2  ;;  %v427_v11 = vld [vmem:[%s4179_s2 + $0x50] sm:$0xff]  ;;  %v570_v12 = vld [vmem:[%s4180_s3 + $0x48] sm:$0xff]  ;;  %v569_v14 = vld [vmem:[%s4180_s3 + $0x40] sm:$0xff]  ;;  %s2350_s23 = sshll.u32 %s4194_s29, 3 }
  0x4e   : > { %2870 = vmatpush3.msra.mxu1 %v431_v3  ;;  %2647 = vmatprep.subr.mxu0 %v574_v4  ;;  %v426_v13 = vld [vmem:[%s4179_s2 + $0x48] sm:$0xff]  ;;  %v425_v15 = vld [vmem:[%s4179_s2 + $0x40] sm:$0xff]  ;;  %v568_v16 = vld [vmem:[%s4180_s3 + $0x38] sm:$0xff]  ;;  %s3722_s14 = scalar_lea.vmem %s4182_s5, %s2350_s23 }
  0x4f   : > { %2871 = vmatprep.subr.mxu1 %v430_v5  ;;  %2648 = vmatpush3.msra.mxu0 %v574_v4  ;;  %v424_v17 = vld [vmem:[%s4179_s2 + $0x38] sm:$0xff]  ;;  %v567_v18 = vld [vmem:[%s4180_s3 + $0x30] sm:$0xff]  ;;  %v566_v20 = vld [vmem:[%s4180_s3 + $0x28] sm:$0xff] }
  0x50   : > { %2872 = vmatpush3.msra.mxu1 %v430_v5  ;;  %2649 = vmatprep.subr.mxu0 %v573_v6  ;;  %v423_v19 = vld [vmem:[%s4179_s2 + $0x30] sm:$0xff]  ;;  %v422_v21 = vld [vmem:[%s4179_s2 + $0x28] sm:$0xff]  ;;  %v565_v22 = vld [vmem:[%s4180_s3 + $0x20] sm:$0xff] }
  0x51   : > { %2873 = vmatprep.subr.mxu1 %v429_v7  ;;  %2650 = vmatpush3.msra.mxu0 %v573_v6  ;;  %v421_v23 = vld [vmem:[%s4179_s2 + $0x20] sm:$0xff]  ;;  %v564_v24 = vld [vmem:[%s4180_s3 + $0x18] sm:$0xff]  ;;  %v563_v26 = vld [vmem:[%s4180_s3 + $0x10] sm:$0xff] }
  0x52   : > { %2874 = vmatpush3.msra.mxu1 %v429_v7  ;;  %2651 = vmatprep.subr.mxu0 %v572_v8  ;;  %v420_v25 = vld [vmem:[%s4179_s2 + $0x18] sm:$0xff]  ;;  %v419_v27 = vld [vmem:[%s4179_s2 + $0x10] sm:$0xff]  ;;  %v562_v28 = vld [vmem:[%s4180_s3 + $0x8] sm:$0xff] }
  0x53   : > { %2875 = vmatprep.subr.mxu1 %v428_v9  ;;  %2652 = vmatpush3.msra.mxu0 %v572_v8  ;;  %v418_v29 = vld [vmem:[%s4179_s2 + $0x8] sm:$0xff]  ;;  %v561_v30 = vld [vmem:[%s4180_s3] sm:$0xff]  ;;  %v435_v36 = vld [vmem:[%s3413_s13 + $0x10] sm:$0xff] }
  0x54   : > { %2876 = vmatpush3.msra.mxu1 %v428_v9  ;;  %2653 = vmatprep.subr.mxu0 %v571_v10  ;;  %v417_v31 = vld [vmem:[%s4179_s2] sm:$0xff]  ;;  %v434_v34 = vld [vmem:[%s3413_s13 + $0x8] sm:$0xff]  ;;  %v291_v37 = vld [vmem:[%s3407_s6 + $0x10] sm:$0xff] }
  0x55   : > { %2877 = vmatprep.subr.mxu1 %v427_v11  ;;  %2654 = vmatpush3.msra.mxu0 %v571_v10  ;;  %v433_v32 = vld [vmem:[%s3413_s13] sm:$0xff]  ;;  %v290_v35 = vld [vmem:[%s3407_s6 + $0x8] sm:$0xff]  ;;  %v436_v38 = vld [vmem:[%s3413_s13 + $0x18] sm:$0xff] }
  0x56   : > { %2878 = vmatpush3.msra.mxu1 %v427_v11  ;;  %2655 = vmatprep.subr.mxu0 %v570_v12  ;;  %v289_v33 = vld [vmem:[%s3407_s6] sm:$0xff]  ;;  %v292_v39 = vld [vmem:[%s3407_s6 + $0x18] sm:$0xff]  ;;  %v438_v42 = vld [vmem:[%s3413_s13 + $0x28] sm:$0xff] }
  0x57   : > { %2879 = vmatprep.subr.mxu1 %v426_v13  ;;  %2656 = vmatpush3.msra.mxu0 %v570_v12  ;;  %v437_v40 = vld [vmem:[%s3413_s13 + $0x20] sm:$0xff]  ;;  %v294_v43 = vld [vmem:[%s3407_s6 + $0x28] sm:$0xff]  ;;  %v439_v44 = vld [vmem:[%s3413_s13 + $0x30] sm:$0xff] }
  0x58   : > { %2880 = vmatpush3.msra.mxu1 %v426_v13  ;;  %2657 = vmatprep.subr.mxu0 %v569_v14  ;;  %v293_v41 = vld [vmem:[%s3407_s6 + $0x20] sm:$0xff]  ;;  %v295_v45 = vld [vmem:[%s3407_s6 + $0x30] sm:$0xff]  ;;  %v440_v46 = vld [vmem:[%s3413_s13 + $0x38] sm:$0xff] }
  0x59   : > { %2881 = vmatprep.subr.mxu1 %v425_v15  ;;  %2658 = vmatpush3.msra.mxu0 %v569_v14  ;;  %v296_v47 = vld [vmem:[%s3407_s6 + $0x38] sm:$0xff]  ;;  %v441_v48 = vld [vmem:[%s3413_s13 + $0x40] sm:$0xff]  ;;  %v442_v50 = vld [vmem:[%s3413_s13 + $0x48] sm:$0xff] }
  0x5a   : > { %2882 = vmatpush3.msra.mxu1 %v425_v15  ;;  %2659 = vmatprep.subr.mxu0 %v568_v16  ;;  %v297_v49 = vld [vmem:[%s3407_s6 + $0x40] sm:$0xff]  ;;  %v298_v51 = vld [vmem:[%s3407_s6 + $0x48] sm:$0xff]  ;;  %v443_v52 = vld [vmem:[%s3413_s13 + $0x50] sm:$0xff] }
  0x5b   : > { %2883 = vmatprep.subr.mxu1 %v424_v17  ;;  %2660 = vmatpush3.msra.mxu0 %v568_v16  ;;  %v299_v53 = vld [vmem:[%s3407_s6 + $0x50] sm:$0xff]  ;;  %v444_v54 = vld [vmem:[%s3413_s13 + $0x58] sm:$0xff]  ;;  %v445_v56 = vld [vmem:[%s3413_s13 + $0x60] sm:$0xff] }
  0x5c   : > { %2884 = vmatpush3.msra.mxu1 %v424_v17  ;;  %2661 = vmatprep.subr.mxu0 %v567_v18  ;;  %v300_v55 = vld [vmem:[%s3407_s6 + $0x58] sm:$0xff]  ;;  %v301_v57 = vld [vmem:[%s3407_s6 + $0x60] sm:$0xff]  ;;  %v446_v58 = vld [vmem:[%s3413_s13 + $0x68] sm:$0xff] }
  0x5d   : > { %2885 = vmatprep.subr.mxu1 %v423_v19  ;;  %2662 = vmatpush3.msra.mxu0 %v567_v18  ;;  %v302_v59 = vld [vmem:[%s3407_s6 + $0x68] sm:$0xff]  ;;  %v447_v60 = vld [vmem:[%s3413_s13 + $0x70] sm:$0xff]  ;;  %v448_v62 = vld [vmem:[%s3413_s13 + $0x78] sm:$0xff] }
  0x5e   : > { %2886 = vmatpush3.msra.mxu1 %v423_v19  ;;  %2663 = vmatprep.subr.mxu0 %v566_v20  ;;  %v303_v61 = vld [vmem:[%s3407_s6 + $0x70] sm:$0xff]  ;;  %v304_v63 = vld [vmem:[%s3407_s6 + $0x78] sm:$0xff]  ;;  %v449_v0 = vld [vmem:[%s3413_s13 + $0x80] sm:$0xff] }
  0x5f   : > { %2887 = vmatprep.subr.mxu1 %v422_v21  ;;  %2664 = vmatpush3.msra.mxu0 %v566_v20  ;;  %v305_v1 = vld [vmem:[%s3407_s6 + $0x80] sm:$0xff]  ;;  %v450_v2 = vld [vmem:[%s3413_s13 + $0x88] sm:$0xff]  ;;  %v451_v4 = vld [vmem:[%s3413_s13 + $0x90] sm:$0xff] }
  0x60   : > { %2888 = vmatpush3.msra.mxu1 %v422_v21  ;;  %2665 = vmatprep.subr.mxu0 %v565_v22  ;;  %v306_v3 = vld [vmem:[%s3407_s6 + $0x88] sm:$0xff]  ;;  %v307_v5 = vld [vmem:[%s3407_s6 + $0x90] sm:$0xff]  ;;  %v452_v6 = vld [vmem:[%s3413_s13 + $0x98] sm:$0xff] }
  0x61   : > { %2889 = vmatprep.subr.mxu1 %v421_v23  ;;  %2666 = vmatpush3.msra.mxu0 %v565_v22  ;;  %v308_v7 = vld [vmem:[%s3407_s6 + $0x98] sm:$0xff]  ;;  %v453_v8 = vld [vmem:[%s3413_s13 + $0xa0] sm:$0xff]  ;;  %v454_v10 = vld [vmem:[%s3413_s13 + $0xa8] sm:$0xff] }
  0x62   : > { %2890 = vmatpush3.msra.mxu1 %v421_v23  ;;  %2667 = vmatprep.subr.mxu0 %v564_v24  ;;  %v309_v9 = vld [vmem:[%s3407_s6 + $0xa0] sm:$0xff]  ;;  %v310_v11 = vld [vmem:[%s3407_s6 + $0xa8] sm:$0xff]  ;;  %v455_v12 = vld [vmem:[%s3413_s13 + $0xb0] sm:$0xff] }
  0x63   : > { %2891 = vmatprep.subr.mxu1 %v420_v25  ;;  %2668 = vmatpush3.msra.mxu0 %v564_v24  ;;  %v311_v13 = vld [vmem:[%s3407_s6 + $0xb0] sm:$0xff]  ;;  %v456_v14 = vld [vmem:[%s3413_s13 + $0xb8] sm:$0xff]  ;;  %v457_v16 = vld [vmem:[%s3413_s13 + $0xc0] sm:$0xff] }
  0x64   : > { %2892 = vmatpush3.msra.mxu1 %v420_v25  ;;  %2669 = vmatprep.subr.mxu0 %v563_v26  ;;  %v312_v15 = vld [vmem:[%s3407_s6 + $0xb8] sm:$0xff]  ;;  %v313_v17 = vld [vmem:[%s3407_s6 + $0xc0] sm:$0xff]  ;;  %v458_v18 = vld [vmem:[%s3413_s13 + $0xc8] sm:$0xff] }
  0x65   : > { %2893 = vmatprep.subr.mxu1 %v419_v27  ;;  %2670 = vmatpush3.msra.mxu0 %v563_v26  ;;  %v314_v19 = vld [vmem:[%s3407_s6 + $0xc8] sm:$0xff]  ;;  %v459_v20 = vld [vmem:[%s3413_s13 + $0xd0] sm:$0xff]  ;;  %v460_v22 = vld [vmem:[%s3413_s13 + $0xd8] sm:$0xff] }
  0x66   : > { %2894 = vmatpush3.msra.mxu1 %v419_v27  ;;  %2671 = vmatprep.subr.mxu0 %v562_v28  ;;  %v315_v21 = vld [vmem:[%s3407_s6 + $0xd0] sm:$0xff]  ;;  %v316_v23 = vld [vmem:[%s3407_s6 + $0xd8] sm:$0xff]  ;;  %v461_v24 = vld [vmem:[%s3413_s13 + $0xe0] sm:$0xff] }
  0x67   : > { %2895 = vmatprep.subr.mxu1 %v418_v29  ;;  %2672 = vmatpush3.msra.mxu0 %v562_v28  ;;  %v317_v25 = vld [vmem:[%s3407_s6 + $0xe0] sm:$0xff]  ;;  %v462_v26 = vld [vmem:[%s3413_s13 + $0xe8] sm:$0xff]  ;;  %v463_v28 = vld [vmem:[%s3413_s13 + $0xf0] sm:$0xff] }
  0x68   : > { %2896 = vmatpush3.msra.mxu1 %v418_v29  ;;  %2673 = vmatprep.subr.mxu0 %v561_v30  ;;  %v318_v27 = vld [vmem:[%s3407_s6 + $0xe8] sm:$0xff]  ;;  %v319_v29 = vld [vmem:[%s3407_s6 + $0xf0] sm:$0xff] }
  0x69   : > { %2897 = vmatprep.subr.mxu1 %v417_v31  ;;  %2674 = vmatpush3.msra.mxu0 %v561_v30  ;;  %v464_v30 = vld [vmem:[%s3413_s13 + $0xf8] sm:$0xff] }
  0x6a   : > { %2675 = vmatprep.mubr.f32.mxu0 %v433_v32  ;;  %2898 = vmatpush3.msra.mxu1 %v417_v31  ;;  %v320_v31 = vld [vmem:[%s3407_s6 + $0xf8] sm:$0xff]  ;;  %v465_v32 = vld [vmem:[%s3413_s13 + $0x100] sm:$0xff] }
  0x6b   : > { %2899 = vmatprep.mubr.f32.mxu1 %v289_v33  ;;  %2676 = vmatmul.mubr.f32.vlgmr.msra.gmra.mxu0 %v434_v34  ;;  %v321_v33 = vld [vmem:[%s3407_s6 + $0x100] sm:$0xff]  ;;  %v466_v34 = vld [vmem:[%s3413_s13 + $0x108] sm:$0xff] }
  0x6c   : > { %2900 = vmatmul.mubr.f32.vlgmr.msra.gmra.mxu1 %v290_v35  ;;  %2678 = vmatprep.mubr.f32.mxu0 %v435_v36  ;;  %v322_v35 = vld [vmem:[%s3407_s6 + $0x108] sm:$0xff]  ;;  %v467_v36 = vld [vmem:[%s3413_s13 + $0x110] sm:$0xff] }
  0x6d   : > { %2902 = vmatprep.mubr.f32.mxu1 %v291_v37  ;;  %v323_v37 = vld [vmem:[%s3407_s6 + $0x110] sm:$0xff] }
  0x6f   : > { %2679 = vmatmul.mubr.f32.gmra.mxu0 %v436_v38  ;;  %v468_v38 = vld [vmem:[%s3413_s13 + $0x118] sm:$0xff] }
  0x70   : > { %2903 = vmatmul.mubr.f32.gmra.mxu1 %v292_v39  ;;  %2681 = vmatprep.mubr.f32.mxu0 %v437_v40  ;;  %v324_v39 = vld [vmem:[%s3407_s6 + $0x118] sm:$0xff]  ;;  %v469_v40 = vld [vmem:[%s3413_s13 + $0x120] sm:$0xff] }
  0x71   : > { %2905 = vmatprep.mubr.f32.mxu1 %v293_v41  ;;  %v325_v41 = vld [vmem:[%s3407_s6 + $0x120] sm:$0xff] }
  0x73   : > { %2682 = vmatmul.mubr.f32.gmra.mxu0 %v438_v42  ;;  %v470_v42 = vld [vmem:[%s3413_s13 + $0x128] sm:$0xff] }
  0x74   : > { %2906 = vmatmul.mubr.f32.gmra.mxu1 %v294_v43  ;;  %2684 = vmatprep.mubr.f32.mxu0 %v439_v44  ;;  %v326_v43 = vld [vmem:[%s3407_s6 + $0x128] sm:$0xff]  ;;  %v471_v44 = vld [vmem:[%s3413_s13 + $0x130] sm:$0xff] }
  0x75   : > { %2908 = vmatprep.mubr.f32.mxu1 %v295_v45  ;;  %v327_v45 = vld [vmem:[%s3407_s6 + $0x130] sm:$0xff] }
  0x77   : > { %2685 = vmatmul.mubr.f32.gmra.mxu0 %v440_v46  ;;  %v472_v46 = vld [vmem:[%s3413_s13 + $0x138] sm:$0xff] }
  0x78   : > { %2909 = vmatmul.mubr.f32.gmra.mxu1 %v296_v47  ;;  %2687 = vmatprep.mubr.f32.mxu0 %v441_v48  ;;  %v328_v47 = vld [vmem:[%s3407_s6 + $0x138] sm:$0xff]  ;;  %v473_v48 = vld [vmem:[%s3413_s13 + $0x140] sm:$0xff] }
  0x79   : > { %2911 = vmatprep.mubr.f32.mxu1 %v297_v49  ;;  %v329_v49 = vld [vmem:[%s3407_s6 + $0x140] sm:$0xff] }
  0x7b   : > { %2688 = vmatmul.mubr.f32.gmra.mxu0 %v442_v50  ;;  %v474_v50 = vld [vmem:[%s3413_s13 + $0x148] sm:$0xff] }
  0x7c   : > { %2912 = vmatmul.mubr.f32.gmra.mxu1 %v298_v51  ;;  %2690 = vmatprep.mubr.f32.mxu0 %v443_v52  ;;  %v330_v51 = vld [vmem:[%s3407_s6 + $0x148] sm:$0xff]  ;;  %v475_v52 = vld [vmem:[%s3413_s13 + $0x150] sm:$0xff] }
  0x7d   : > { %2914 = vmatprep.mubr.f32.mxu1 %v299_v53  ;;  %v331_v53 = vld [vmem:[%s3407_s6 + $0x150] sm:$0xff] }
  0x7f   : > { %2691 = vmatmul.mubr.f32.gmra.mxu0 %v444_v54  ;;  %v476_v54 = vld [vmem:[%s3413_s13 + $0x158] sm:$0xff] }
  0x80   : > { %2915 = vmatmul.mubr.f32.gmra.mxu1 %v300_v55  ;;  %2693 = vmatprep.mubr.f32.mxu0 %v445_v56  ;;  %v332_v55 = vld [vmem:[%s3407_s6 + $0x158] sm:$0xff]  ;;  %v477_v56 = vld [vmem:[%s3413_s13 + $0x160] sm:$0xff] }
  0x81   : > { %2917 = vmatprep.mubr.f32.mxu1 %v301_v57  ;;  %v333_v57 = vld [vmem:[%s3407_s6 + $0x160] sm:$0xff] }
  0x83   : > { %2694 = vmatmul.mubr.f32.gmra.mxu0 %v446_v58  ;;  %v478_v58 = vld [vmem:[%s3413_s13 + $0x168] sm:$0xff] }
  0x84   : > { %2918 = vmatmul.mubr.f32.gmra.mxu1 %v302_v59  ;;  %2696 = vmatprep.mubr.f32.mxu0 %v447_v60  ;;  %v334_v59 = vld [vmem:[%s3407_s6 + $0x168] sm:$0xff]  ;;  %v479_v60 = vld [vmem:[%s3413_s13 + $0x170] sm:$0xff] }
  0x85   : > { %2920 = vmatprep.mubr.f32.mxu1 %v303_v61  ;;  %v335_v61 = vld [vmem:[%s3407_s6 + $0x170] sm:$0xff] }
  0x87   : > { %2697 = vmatmul.mubr.f32.gmra.mxu0 %v448_v62  ;;  %v480_v62 = vld [vmem:[%s3413_s13 + $0x178] sm:$0xff] }
  0x88   : > { %2921 = vmatmul.mubr.f32.gmra.mxu1 %v304_v63  ;;  %2699 = vmatprep.mubr.f32.mxu0 %v449_v0  ;;  %v336_v63 = vld [vmem:[%s3407_s6 + $0x178] sm:$0xff]  ;;  %v481_v0 = vld [vmem:[%s3413_s13 + $0x180] sm:$0xff] }
  0x89   : > { %2923 = vmatprep.mubr.f32.mxu1 %v305_v1  ;;  %v337_v1 = vld [vmem:[%s3407_s6 + $0x180] sm:$0xff] }
  0x8b   : > { %2700 = vmatmul.mubr.f32.gmra.mxu0 %v450_v2  ;;  %v482_v2 = vld [vmem:[%s3413_s13 + $0x188] sm:$0xff] }
  0x8c   : > { %2924 = vmatmul.mubr.f32.gmra.mxu1 %v306_v3  ;;  %2702 = vmatprep.mubr.f32.mxu0 %v451_v4  ;;  %v338_v3 = vld [vmem:[%s3407_s6 + $0x188] sm:$0xff]  ;;  %v483_v4 = vld [vmem:[%s3413_s13 + $0x190] sm:$0xff] }
  0x8d   : > { %2926 = vmatprep.mubr.f32.mxu1 %v307_v5  ;;  %v339_v5 = vld [vmem:[%s3407_s6 + $0x190] sm:$0xff] }
  0x8f   : > { %2703 = vmatmul.mubr.f32.gmra.mxu0 %v452_v6  ;;  %v484_v6 = vld [vmem:[%s3413_s13 + $0x198] sm:$0xff] }
  0x90   : > { %2927 = vmatmul.mubr.f32.gmra.mxu1 %v308_v7  ;;  %2705 = vmatprep.mubr.f32.mxu0 %v453_v8  ;;  %v340_v7 = vld [vmem:[%s3407_s6 + $0x198] sm:$0xff]  ;;  %v485_v8 = vld [vmem:[%s3413_s13 + $0x1a0] sm:$0xff] }
  0x91   : > { %2929 = vmatprep.mubr.f32.mxu1 %v309_v9  ;;  %v341_v9 = vld [vmem:[%s3407_s6 + $0x1a0] sm:$0xff] }
  0x93   : > { %2706 = vmatmul.mubr.f32.gmra.mxu0 %v454_v10  ;;  %v486_v10 = vld [vmem:[%s3413_s13 + $0x1a8] sm:$0xff] }
  0x94   : > { %2930 = vmatmul.mubr.f32.gmra.mxu1 %v310_v11  ;;  %2708 = vmatprep.mubr.f32.mxu0 %v455_v12  ;;  %v342_v11 = vld [vmem:[%s3407_s6 + $0x1a8] sm:$0xff]  ;;  %v487_v12 = vld [vmem:[%s3413_s13 + $0x1b0] sm:$0xff] }
  0x95   : > { %2932 = vmatprep.mubr.f32.mxu1 %v311_v13  ;;  %v343_v13 = vld [vmem:[%s3407_s6 + $0x1b0] sm:$0xff] }
  0x97   : > { %2709 = vmatmul.mubr.f32.gmra.mxu0 %v456_v14  ;;  %v488_v14 = vld [vmem:[%s3413_s13 + $0x1b8] sm:$0xff] }
  0x98   : > { %2933 = vmatmul.mubr.f32.gmra.mxu1 %v312_v15  ;;  %2711 = vmatprep.mubr.f32.mxu0 %v457_v16  ;;  %v344_v15 = vld [vmem:[%s3407_s6 + $0x1b8] sm:$0xff]  ;;  %v489_v16 = vld [vmem:[%s3413_s13 + $0x1c0] sm:$0xff] }
  0x99   : > { %2935 = vmatprep.mubr.f32.mxu1 %v313_v17  ;;  %v345_v17 = vld [vmem:[%s3407_s6 + $0x1c0] sm:$0xff] }
  0x9b   : > { %2712 = vmatmul.mubr.f32.gmra.mxu0 %v458_v18  ;;  %v490_v18 = vld [vmem:[%s3413_s13 + $0x1c8] sm:$0xff] }
  0x9c   : > { %2936 = vmatmul.mubr.f32.gmra.mxu1 %v314_v19  ;;  %2714 = vmatprep.mubr.f32.mxu0 %v459_v20  ;;  %v346_v19 = vld [vmem:[%s3407_s6 + $0x1c8] sm:$0xff]  ;;  %v491_v20 = vld [vmem:[%s3413_s13 + $0x1d0] sm:$0xff] }
  0x9d   : > { %2938 = vmatprep.mubr.f32.mxu1 %v315_v21  ;;  %v347_v21 = vld [vmem:[%s3407_s6 + $0x1d0] sm:$0xff] }
  0x9f   : > { %2715 = vmatmul.mubr.f32.gmra.mxu0 %v460_v22  ;;  %v492_v22 = vld [vmem:[%s3413_s13 + $0x1d8] sm:$0xff] }
  0xa0   : > { %2939 = vmatmul.mubr.f32.gmra.mxu1 %v316_v23  ;;  %2717 = vmatprep.mubr.f32.mxu0 %v461_v24  ;;  %v348_v23 = vld [vmem:[%s3407_s6 + $0x1d8] sm:$0xff]  ;;  %v493_v24 = vld [vmem:[%s3413_s13 + $0x1e0] sm:$0xff] }
  0xa1   : > { %2941 = vmatprep.mubr.f32.mxu1 %v317_v25  ;;  %v349_v25 = vld [vmem:[%s3407_s6 + $0x1e0] sm:$0xff] }
  0xa3   : > { %2718 = vmatmul.mubr.f32.gmra.mxu0 %v462_v26  ;;  %v494_v26 = vld [vmem:[%s3413_s13 + $0x1e8] sm:$0xff] }
  0xa4   : > { %2942 = vmatmul.mubr.f32.gmra.mxu1 %v318_v27  ;;  %2720 = vmatprep.mubr.f32.mxu0 %v463_v28  ;;  %v350_v27 = vld [vmem:[%s3407_s6 + $0x1e8] sm:$0xff]  ;;  %v495_v28 = vld [vmem:[%s3413_s13 + $0x1f0] sm:$0xff] }
  0xa5   : > { %2944 = vmatprep.mubr.f32.mxu1 %v319_v29  ;;  %v351_v29 = vld [vmem:[%s3407_s6 + $0x1f0] sm:$0xff] }
  0xa7   : > { %2721 = vmatmul.mubr.f32.gmra.mxu0 %v464_v30  ;;  %v496_v30 = vld [vmem:[%s3413_s13 + $0x1f8] sm:$0xff] }
  0xa8   : > { %2945 = vmatmul.mubr.f32.gmra.mxu1 %v320_v31  ;;  %2723 = vmatprep.mubr.f32.mxu0 %v465_v32  ;;  %v352_v31 = vld [vmem:[%s3407_s6 + $0x1f8] sm:$0xff]  ;;  %v497_v32 = vld [vmem:[%s3413_s13 + $0x200] sm:$0xff] }
  0xa9   : > { %2947 = vmatprep.mubr.f32.mxu1 %v321_v33  ;;  %v353_v33 = vld [vmem:[%s3407_s6 + $0x200] sm:$0xff] }
  0xab   : > { %2724 = vmatmul.mubr.f32.gmra.mxu0 %v466_v34  ;;  %v498_v34 = vld [vmem:[%s3413_s13 + $0x208] sm:$0xff] }
  0xac   : > { %2948 = vmatmul.mubr.f32.gmra.mxu1 %v322_v35  ;;  %2726 = vmatprep.mubr.f32.mxu0 %v467_v36  ;;  %v354_v35 = vld [vmem:[%s3407_s6 + $0x208] sm:$0xff]  ;;  %v499_v36 = vld [vmem:[%s3413_s13 + $0x210] sm:$0xff] }
  0xad   : > { %2950 = vmatprep.mubr.f32.mxu1 %v323_v37  ;;  %v355_v37 = vld [vmem:[%s3407_s6 + $0x210] sm:$0xff] }
  0xaf   : > { %2727 = vmatmul.mubr.f32.gmra.mxu0 %v468_v38  ;;  %v500_v38 = vld [vmem:[%s3413_s13 + $0x218] sm:$0xff] }
  0xb0   : > { %2951 = vmatmul.mubr.f32.gmra.mxu1 %v324_v39  ;;  %2729 = vmatprep.mubr.f32.mxu0 %v469_v40  ;;  %v356_v39 = vld [vmem:[%s3407_s6 + $0x218] sm:$0xff]  ;;  %v501_v40 = vld [vmem:[%s3413_s13 + $0x220] sm:$0xff] }
  0xb1   : > { %2953 = vmatprep.mubr.f32.mxu1 %v325_v41  ;;  %v357_v41 = vld [vmem:[%s3407_s6 + $0x220] sm:$0xff] }
  0xb3   : > { %2730 = vmatmul.mubr.f32.gmra.mxu0 %v470_v42  ;;  %v502_v42 = vld [vmem:[%s3413_s13 + $0x228] sm:$0xff] }
  0xb4   : > { %2954 = vmatmul.mubr.f32.gmra.mxu1 %v326_v43  ;;  %2732 = vmatprep.mubr.f32.mxu0 %v471_v44  ;;  %v358_v43 = vld [vmem:[%s3407_s6 + $0x228] sm:$0xff]  ;;  %v503_v44 = vld [vmem:[%s3413_s13 + $0x230] sm:$0xff] }
  0xb5   : > { %2956 = vmatprep.mubr.f32.mxu1 %v327_v45  ;;  %v359_v45 = vld [vmem:[%s3407_s6 + $0x230] sm:$0xff] }
  0xb7   : > { %2733 = vmatmul.mubr.f32.gmra.mxu0 %v472_v46  ;;  %v504_v46 = vld [vmem:[%s3413_s13 + $0x238] sm:$0xff] }
  0xb8   : > { %2957 = vmatmul.mubr.f32.gmra.mxu1 %v328_v47  ;;  %2735 = vmatprep.mubr.f32.mxu0 %v473_v48  ;;  %v360_v47 = vld [vmem:[%s3407_s6 + $0x238] sm:$0xff]  ;;  %v505_v48 = vld [vmem:[%s3413_s13 + $0x240] sm:$0xff] }
  0xb9   : > { %2959 = vmatprep.mubr.f32.mxu1 %v329_v49  ;;  %v361_v49 = vld [vmem:[%s3407_s6 + $0x240] sm:$0xff] }
  0xbb   : > { %2736 = vmatmul.mubr.f32.gmra.mxu0 %v474_v50  ;;  %v506_v50 = vld [vmem:[%s3413_s13 + $0x248] sm:$0xff] }
  0xbc   : > { %2960 = vmatmul.mubr.f32.gmra.mxu1 %v330_v51  ;;  %2738 = vmatprep.mubr.f32.mxu0 %v475_v52  ;;  %v362_v51 = vld [vmem:[%s3407_s6 + $0x248] sm:$0xff]  ;;  %v507_v52 = vld [vmem:[%s3413_s13 + $0x250] sm:$0xff] }
  0xbd   : > { %2962 = vmatprep.mubr.f32.mxu1 %v331_v53  ;;  %v363_v53 = vld [vmem:[%s3407_s6 + $0x250] sm:$0xff] }
  0xbf   : > { %2739 = vmatmul.mubr.f32.gmra.mxu0 %v476_v54  ;;  %v508_v54 = vld [vmem:[%s3413_s13 + $0x258] sm:$0xff] }
  0xc0   : > { %2963 = vmatmul.mubr.f32.gmra.mxu1 %v332_v55  ;;  %2741 = vmatprep.mubr.f32.mxu0 %v477_v56  ;;  %v364_v55 = vld [vmem:[%s3407_s6 + $0x258] sm:$0xff]  ;;  %v509_v56 = vld [vmem:[%s3413_s13 + $0x260] sm:$0xff] }
  0xc1   : > { %2965 = vmatprep.mubr.f32.mxu1 %v333_v57  ;;  %v365_v57 = vld [vmem:[%s3407_s6 + $0x260] sm:$0xff] }
  0xc3   : > { %2742 = vmatmul.mubr.f32.gmra.mxu0 %v478_v58  ;;  %v510_v58 = vld [vmem:[%s3413_s13 + $0x268] sm:$0xff] }
  0xc4   : > { %2966 = vmatmul.mubr.f32.gmra.mxu1 %v334_v59  ;;  %2744 = vmatprep.mubr.f32.mxu0 %v479_v60  ;;  %v366_v59 = vld [vmem:[%s3407_s6 + $0x268] sm:$0xff]  ;;  %v511_v60 = vld [vmem:[%s3413_s13 + $0x270] sm:$0xff] }
  0xc5   : > { %2968 = vmatprep.mubr.f32.mxu1 %v335_v61  ;;  %v367_v61 = vld [vmem:[%s3407_s6 + $0x270] sm:$0xff] }
  0xc7   : > { %2745 = vmatmul.mubr.f32.gmra.mxu0 %v480_v62  ;;  %v512_v62 = vld [vmem:[%s3413_s13 + $0x278] sm:$0xff] }
  0xc8   : > { %2969 = vmatmul.mubr.f32.gmra.mxu1 %v336_v63  ;;  %2747 = vmatprep.mubr.f32.mxu0 %v481_v0  ;;  %v368_v63 = vld [vmem:[%s3407_s6 + $0x278] sm:$0xff]  ;;  %v513_v0 = vld [vmem:[%s3413_s13 + $0x280] sm:$0xff] }
  0xc9   : > { %2971 = vmatprep.mubr.f32.mxu1 %v337_v1  ;;  %v369_v1 = vld [vmem:[%s3407_s6 + $0x280] sm:$0xff] }
  0xcb   : > { %2748 = vmatmul.mubr.f32.gmra.mxu0 %v482_v2  ;;  %v514_v2 = vld [vmem:[%s3413_s13 + $0x288] sm:$0xff] }
  0xcc   : > { %2972 = vmatmul.mubr.f32.gmra.mxu1 %v338_v3  ;;  %2750 = vmatprep.mubr.f32.mxu0 %v483_v4  ;;  %v370_v3 = vld [vmem:[%s3407_s6 + $0x288] sm:$0xff]  ;;  %v515_v4 = vld [vmem:[%s3413_s13 + $0x290] sm:$0xff] }
  0xcd   : > { %2974 = vmatprep.mubr.f32.mxu1 %v339_v5  ;;  %v371_v5 = vld [vmem:[%s3407_s6 + $0x290] sm:$0xff] }
  0xcf   : > { %2751 = vmatmul.mubr.f32.gmra.mxu0 %v484_v6  ;;  %v516_v6 = vld [vmem:[%s3413_s13 + $0x298] sm:$0xff] }
  0xd0   : > { %2975 = vmatmul.mubr.f32.gmra.mxu1 %v340_v7  ;;  %2753 = vmatprep.mubr.f32.mxu0 %v485_v8  ;;  %v372_v7 = vld [vmem:[%s3407_s6 + $0x298] sm:$0xff]  ;;  %v517_v8 = vld [vmem:[%s3413_s13 + $0x2a0] sm:$0xff] }
  0xd1   : > { %2977 = vmatprep.mubr.f32.mxu1 %v341_v9  ;;  %v373_v9 = vld [vmem:[%s3407_s6 + $0x2a0] sm:$0xff] }
  0xd3   : > { %2754 = vmatmul.mubr.f32.gmra.mxu0 %v486_v10  ;;  %v518_v10 = vld [vmem:[%s3413_s13 + $0x2a8] sm:$0xff] }
  0xd4   : > { %2978 = vmatmul.mubr.f32.gmra.mxu1 %v342_v11  ;;  %2756 = vmatprep.mubr.f32.mxu0 %v487_v12  ;;  %v374_v11 = vld [vmem:[%s3407_s6 + $0x2a8] sm:$0xff]  ;;  %v519_v12 = vld [vmem:[%s3413_s13 + $0x2b0] sm:$0xff] }
  0xd5   : > { %2980 = vmatprep.mubr.f32.mxu1 %v343_v13  ;;  %v375_v13 = vld [vmem:[%s3407_s6 + $0x2b0] sm:$0xff] }
  0xd7   : > { %2757 = vmatmul.mubr.f32.gmra.mxu0 %v488_v14  ;;  %v520_v14 = vld [vmem:[%s3413_s13 + $0x2b8] sm:$0xff] }
  0xd8   : > { %2981 = vmatmul.mubr.f32.gmra.mxu1 %v344_v15  ;;  %2759 = vmatprep.mubr.f32.mxu0 %v489_v16  ;;  %v376_v15 = vld [vmem:[%s3407_s6 + $0x2b8] sm:$0xff]  ;;  %v521_v16 = vld [vmem:[%s3413_s13 + $0x2c0] sm:$0xff] }
  0xd9   : > { %2983 = vmatprep.mubr.f32.mxu1 %v345_v17  ;;  %v377_v17 = vld [vmem:[%s3407_s6 + $0x2c0] sm:$0xff] }
  0xdb   : > { %2760 = vmatmul.mubr.f32.gmra.mxu0 %v490_v18  ;;  %v522_v18 = vld [vmem:[%s3413_s13 + $0x2c8] sm:$0xff] }
  0xdc   : > { %2984 = vmatmul.mubr.f32.gmra.mxu1 %v346_v19  ;;  %2762 = vmatprep.mubr.f32.mxu0 %v491_v20  ;;  %v378_v19 = vld [vmem:[%s3407_s6 + $0x2c8] sm:$0xff]  ;;  %v523_v20 = vld [vmem:[%s3413_s13 + $0x2d0] sm:$0xff] }
  0xdd   : > { %2986 = vmatprep.mubr.f32.mxu1 %v347_v21  ;;  %v379_v21 = vld [vmem:[%s3407_s6 + $0x2d0] sm:$0xff] }
  0xdf   : > { %2763 = vmatmul.mubr.f32.gmra.mxu0 %v492_v22  ;;  %v524_v22 = vld [vmem:[%s3413_s13 + $0x2d8] sm:$0xff] }
  0xe0   : > { %2987 = vmatmul.mubr.f32.gmra.mxu1 %v348_v23  ;;  %2765 = vmatprep.mubr.f32.mxu0 %v493_v24  ;;  %v380_v23 = vld [vmem:[%s3407_s6 + $0x2d8] sm:$0xff]  ;;  %v525_v24 = vld [vmem:[%s3413_s13 + $0x2e0] sm:$0xff] }
  0xe1   : > { %2989 = vmatprep.mubr.f32.mxu1 %v349_v25  ;;  %v381_v25 = vld [vmem:[%s3407_s6 + $0x2e0] sm:$0xff] }
  0xe3   : > { %2766 = vmatmul.mubr.f32.gmra.mxu0 %v494_v26  ;;  %v526_v26 = vld [vmem:[%s3413_s13 + $0x2e8] sm:$0xff] }
  0xe4   : > { %2990 = vmatmul.mubr.f32.gmra.mxu1 %v350_v27  ;;  %2768 = vmatprep.mubr.f32.mxu0 %v495_v28  ;;  %v382_v27 = vld [vmem:[%s3407_s6 + $0x2e8] sm:$0xff]  ;;  %v527_v28 = vld [vmem:[%s3413_s13 + $0x2f0] sm:$0xff] }
  0xe5   : > { %2992 = vmatprep.mubr.f32.mxu1 %v351_v29  ;;  %v383_v29 = vld [vmem:[%s3407_s6 + $0x2f0] sm:$0xff] }
  0xe7   : > { %2769 = vmatmul.mubr.f32.gmra.mxu0 %v496_v30  ;;  %v528_v30 = vld [vmem:[%s3413_s13 + $0x2f8] sm:$0xff] }
  0xe8   : > { %2993 = vmatmul.mubr.f32.gmra.mxu1 %v352_v31  ;;  %2771 = vmatprep.mubr.f32.mxu0 %v497_v32  ;;  %v384_v31 = vld [vmem:[%s3407_s6 + $0x2f8] sm:$0xff]  ;;  %v529_v32 = vld [vmem:[%s3413_s13 + $0x300] sm:$0xff] }
  0xe9   : > { %2995 = vmatprep.mubr.f32.mxu1 %v353_v33  ;;  %v385_v33 = vld [vmem:[%s3407_s6 + $0x300] sm:$0xff] }
  0xeb   : > { %2772 = vmatmul.mubr.f32.gmra.mxu0 %v498_v34  ;;  %v530_v34 = vld [vmem:[%s3413_s13 + $0x308] sm:$0xff] }
  0xec   : > { %2996 = vmatmul.mubr.f32.gmra.mxu1 %v354_v35  ;;  %2774 = vmatprep.mubr.f32.mxu0 %v499_v36  ;;  %v386_v35 = vld [vmem:[%s3407_s6 + $0x308] sm:$0xff]  ;;  %v531_v36 = vld [vmem:[%s3413_s13 + $0x310] sm:$0xff] }
  0xed   : > { %2998 = vmatprep.mubr.f32.mxu1 %v355_v37  ;;  %v387_v37 = vld [vmem:[%s3407_s6 + $0x310] sm:$0xff] }
  0xef   : > { %2775 = vmatmul.mubr.f32.gmra.mxu0 %v500_v38 }
  0xf0   : > { %2999 = vmatmul.mubr.f32.gmra.mxu1 %v356_v39  ;;  %2777 = vmatprep.mubr.f32.mxu0 %v501_v40  ;;  %v3715_v40 = vstv %s1987_s30 }
  0xf1   : > { %3001 = vmatprep.mubr.f32.mxu1 %v357_v41 }
  0xf3   : > { %2778 = vmatmul.mubr.f32.gmra.mxu0 %v502_v42  ;;  %v532_v42 = vld [vmem:[%s3413_s13 + $0x318] sm:$0xff] }
  0xf4   : > { %3002 = vmatmul.mubr.f32.gmra.mxu1 %v358_v43  ;;  %2780 = vmatprep.mubr.f32.mxu0 %v503_v44  ;;  %v388_v43 = vld [vmem:[%s3407_s6 + $0x318] sm:$0xff] }
  0xf5   : > { %3004 = vmatprep.mubr.f32.mxu1 %v359_v45 }
  0xf7   : > { %2781 = vmatmul.mubr.f32.gmra.mxu0 %v504_v46  ;;  %v533_v46 = vld [vmem:[%s3413_s13 + $0x320] sm:$0xff] }
  0xf8   : > { %3005 = vmatmul.mubr.f32.gmra.mxu1 %v360_v47  ;;  %2783 = vmatprep.mubr.f32.mxu0 %v505_v48  ;;  %v389_v47 = vld [vmem:[%s3407_s6 + $0x320] sm:$0xff] }
  0xf9   : > { %3007 = vmatprep.mubr.f32.mxu1 %v361_v49 }
  0xfb   : > { %2784 = vmatmul.mubr.f32.gmra.mxu0 %v506_v50 }
  0xfc   : > { %3008 = vmatmul.mubr.f32.gmra.mxu1 %v362_v51  ;;  %2786 = vmatprep.mubr.f32.mxu0 %v507_v52 }
  0xfd   : > { %3010 = vmatprep.mubr.f32.mxu1 %v363_v53 }
  0xff   : > { %2787 = vmatmul.mubr.f32.gmra.mxu0 %v508_v54  ;;  %v534_v54 = vld [vmem:[%s3413_s13 + $0x328] sm:$0xff] }
 0x100   : > { %3011 = vmatmul.mubr.f32.gmra.mxu1 %v364_v55  ;;  %2789 = vmatprep.mubr.f32.mxu0 %v509_v56  ;;  %v390_v55 = vld [vmem:[%s3407_s6 + $0x328] sm:$0xff] }
 0x101   : > { %3013 = vmatprep.mubr.f32.mxu1 %v365_v57 }
 0x103   : > { %2790 = vmatmul.mubr.f32.gmra.mxu0 %v510_v58  ;;  %v535_v58 = vld [vmem:[%s3413_s13 + $0x330] sm:$0xff] }
 0x104   : > { %3014 = vmatmul.mubr.f32.gmra.mxu1 %v366_v59  ;;  %2792 = vmatprep.mubr.f32.mxu0 %v511_v60  ;;  %v391_v59 = vld [vmem:[%s3407_s6 + $0x330] sm:$0xff] }
 0x105   : > { %3016 = vmatprep.mubr.f32.mxu1 %v367_v61 }
 0x107   : > { %2793 = vmatmul.mubr.f32.gmra.mxu0 %v512_v62 }
 0x108   : > { %3017 = vmatmul.mubr.f32.gmra.mxu1 %v368_v63  ;;  %2795 = vmatprep.mubr.f32.mxu0 %v513_v0 }
 0x109   : > { %3019 = vmatprep.mubr.f32.mxu1 %v369_v1 }
 0x10b   : > { %2796 = vmatmul.mubr.f32.gmra.mxu0 %v514_v2  ;;  %v536_v2 = vld [vmem:[%s3413_s13 + $0x338] sm:$0xff] }
 0x10c   : > { %3020 = vmatmul.mubr.f32.gmra.mxu1 %v370_v3  ;;  %2798 = vmatprep.mubr.f32.mxu0 %v515_v4  ;;  %v392_v3 = vld [vmem:[%s3407_s6 + $0x338] sm:$0xff] }
 0x10d   : > { %3022 = vmatprep.mubr.f32.mxu1 %v371_v5 }
 0x10f   : > { %2799 = vmatmul.mubr.f32.gmra.mxu0 %v516_v6  ;;  %v537_v6 = vld [vmem:[%s3413_s13 + $0x340] sm:$0xff] }
 0x110   : > { %3023 = vmatmul.mubr.f32.gmra.mxu1 %v372_v7  ;;  %2801 = vmatprep.mubr.f32.mxu0 %v517_v8  ;;  %v393_v7 = vld [vmem:[%s3407_s6 + $0x340] sm:$0xff] }
 0x111   : > { %3025 = vmatprep.mubr.f32.mxu1 %v373_v9 }
 0x113   : > { %2802 = vmatmul.mubr.f32.gmra.mxu0 %v518_v10 }
 0x114   : > { %3026 = vmatmul.mubr.f32.gmra.mxu1 %v374_v11  ;;  %2804 = vmatprep.mubr.f32.mxu0 %v519_v12 }
 0x115   : > { %3028 = vmatprep.mubr.f32.mxu1 %v375_v13 }
 0x117   : > { %2805 = vmatmul.mubr.f32.gmra.mxu0 %v520_v14  ;;  %v538_v14 = vld [vmem:[%s3413_s13 + $0x348] sm:$0xff] }
 0x118   : > { %3029 = vmatmul.mubr.f32.gmra.mxu1 %v376_v15  ;;  %2807 = vmatprep.mubr.f32.mxu0 %v521_v16  ;;  %v394_v15 = vld [vmem:[%s3407_s6 + $0x348] sm:$0xff] }
 0x119   : > { %3031 = vmatprep.mubr.f32.mxu1 %v377_v17 }
 0x11b   : > { %2808 = vmatmul.mubr.f32.gmra.mxu0 %v522_v18  ;;  %v539_v18 = vld [vmem:[%s3413_s13 + $0x350] sm:$0xff] }
 0x11c   : > { %3032 = vmatmul.mubr.f32.gmra.mxu1 %v378_v19  ;;  %2810 = vmatprep.mubr.f32.mxu0 %v523_v20  ;;  %v395_v19 = vld [vmem:[%s3407_s6 + $0x350] sm:$0xff] }
 0x11d   : > { %3034 = vmatprep.mubr.f32.mxu1 %v379_v21 }
 0x11f   : > { %2811 = vmatmul.mubr.f32.gmra.mxu0 %v524_v22 }
 0x120   : > { %3035 = vmatmul.mubr.f32.gmra.mxu1 %v380_v23  ;;  %2813 = vmatprep.mubr.f32.mxu0 %v525_v24 }
 0x121   : > { %3037 = vmatprep.mubr.f32.mxu1 %v381_v25 }
 0x123   : > { %2814 = vmatmul.mubr.f32.gmra.mxu0 %v526_v26  ;;  %v540_v26 = vld [vmem:[%s3413_s13 + $0x358] sm:$0xff] }
 0x124   : > { %3038 = vmatmul.mubr.f32.gmra.mxu1 %v382_v27  ;;  %2816 = vmatprep.mubr.f32.mxu0 %v527_v28  ;;  %v396_v27 = vld [vmem:[%s3407_s6 + $0x358] sm:$0xff] }
 0x125   : > { %3040 = vmatprep.mubr.f32.mxu1 %v383_v29 }
 0x127   : > { %2817 = vmatmul.mubr.f32.gmra.mxu0 %v528_v30  ;;  %v541_v30 = vld [vmem:[%s3413_s13 + $0x360] sm:$0xff] }
 0x128   : > { %3041 = vmatmul.mubr.f32.gmra.mxu1 %v384_v31  ;;  %2819 = vmatprep.mubr.f32.mxu0 %v529_v32  ;;  %v397_v31 = vld [vmem:[%s3407_s6 + $0x360] sm:$0xff] }
 0x129   : > { %3043 = vmatprep.mubr.f32.mxu1 %v385_v33 }
 0x12b   : > { %v2677_v38 = vpop.f32.mrf.mxu0  ;;  %2820 = vmatmul.mubr.f32.gmra.mxu0 %v530_v34 }
 0x12c   : > { %v2901_v39 = vpop.f32.mrf.mxu1  ;;  %3044 = vmatmul.mubr.f32.gmra.mxu1 %v386_v35  ;;  %2822 = vmatprep.mubr.f32.mxu0 %v531_v36 }
 0x12d   : > { %v1354_v41 = vadd.f32 %v2901_v39, %v2677_v38  ;;  %3046 = vmatprep.mubr.f32.mxu1 %v387_v37  ;;  %v643_v44 = vpop.f32.mrf.mxu0  ;;  %v542_v38 = vld [vmem:[%s3413_s13 + $0x368] sm:$0xff] }
 0x12e   : > { %v1348_v45 = vpop.f32.mrf.mxu1  ;;  %v398_v39 = vld [vmem:[%s3407_s6 + $0x368] sm:$0xff] }
 0x12f   : > { %v1990_v48 = vadd.f32 %v3715_v40, %v1354_v41  ;;  %v1349_v49 = vadd.f32 %v1348_v45, %v643_v44  ;;  %v2680_v50 = vpop.f32.mrf.mxu0  ;;  %2823 = vmatmul.mubr.f32.gmra.mxu0 %v532_v42  ;;  %v399_v44 = vld [vmem:[%s3407_s6 + $0x370] sm:$0xff] }
 0x130   : > { %v2904_v51 = vpop.f32.mrf.mxu1  ;;  %3047 = vmatmul.mubr.f32.gmra.mxu1 %v388_v43  ;;  %2825 = vmatprep.mubr.f32.mxu0 %v533_v46  ;;  %v543_v43 = vld [vmem:[%s3413_s13 + $0x370] sm:$0xff] }
 0x131   : > { %2119 = vst.msk [vmem:[%s3722_s14 + $0x8] sm:$0xff] %vm2117_vm0, %v1990_v48  ;;  %v1989_v52 = vadd.f32 %v3715_v40, %v1349_v49  ;;  %v1364_v53 = vadd.f32 %v2904_v51, %v2680_v50  ;;  %3049 = vmatprep.mubr.f32.mxu1 %v389_v47  ;;  %v653_v56 = vpop.f32.mrf.mxu0  ;;  %v544_v51 = vld [vmem:[%s3413_s13 + $0x378] sm:$0xff] }
 0x132   : > { %v1358_v57 = vpop.f32.mrf.mxu1 }
 0x133   : > { %2118 = vst.msk [vmem:[%s3722_s14] sm:$0xff] %vm2117_vm0, %v1989_v52  ;;  %v1992_v60 = vadd.f32 %v3715_v40, %v1364_v53  ;;  %v1359_v61 = vadd.f32 %v1358_v57, %v653_v56  ;;  %v2683_v62 = vpop.f32.mrf.mxu0  ;;  %2826 = vmatmul.mubr.f32.gmra.mxu0 %v534_v54  ;;  %v400_v52 = vld [vmem:[%s3407_s6 + $0x378] sm:$0xff]  ;;  %v401_v56 = vld [vmem:[%s3407_s6 + $0x380] sm:$0xff] }
 0x134   : > { %v2907_v63 = vpop.f32.mrf.mxu1  ;;  %3050 = vmatmul.mubr.f32.gmra.mxu1 %v390_v55  ;;  %2828 = vmatprep.mubr.f32.mxu0 %v535_v58  ;;  %v545_v55 = vld [vmem:[%s3413_s13 + $0x380] sm:$0xff] }
 0x135   : > { %2121 = vst.msk [vmem:[%s3722_s14 + $0x18] sm:$0xff] %vm2117_vm0, %v1992_v60  ;;  %v1991_v0 = vadd.f32 %v3715_v40, %v1359_v61  ;;  %v1374_v1 = vadd.f32 %v2907_v63, %v2683_v62  ;;  %3052 = vmatprep.mubr.f32.mxu1 %v391_v59  ;;  %v663_v4 = vpop.f32.mrf.mxu0  ;;  %v546_v63 = vld [vmem:[%s3413_s13 + $0x388] sm:$0xff] }
 0x136   : > { %v1368_v5 = vpop.f32.mrf.mxu1 }
 0x137   : > { %2120 = vst.msk [vmem:[%s3722_s14 + $0x10] sm:$0xff] %vm2117_vm0, %v1991_v0  ;;  %v1994_v8 = vadd.f32 %v3715_v40, %v1374_v1  ;;  %v1369_v9 = vadd.f32 %v1368_v5, %v663_v4  ;;  %v2686_v10 = vpop.f32.mrf.mxu0  ;;  %2829 = vmatmul.mubr.f32.gmra.mxu0 %v536_v2  ;;  %v402_v0 = vld [vmem:[%s3407_s6 + $0x388] sm:$0xff]  ;;  %v403_v4 = vld [vmem:[%s3407_s6 + $0x390] sm:$0xff] }
 0x138   : > { %v2910_v11 = vpop.f32.mrf.mxu1  ;;  %3053 = vmatmul.mubr.f32.gmra.mxu1 %v392_v3  ;;  %2831 = vmatprep.mubr.f32.mxu0 %v537_v6  ;;  %v547_v3 = vld [vmem:[%s3413_s13 + $0x390] sm:$0xff] }
 0x139   : > { %2123 = vst.msk [vmem:[%s3722_s14 + $0x28] sm:$0xff] %vm2117_vm0, %v1994_v8  ;;  %v1993_v12 = vadd.f32 %v3715_v40, %v1369_v9  ;;  %v1384_v13 = vadd.f32 %v2910_v11, %v2686_v10  ;;  %3055 = vmatprep.mubr.f32.mxu1 %v393_v7  ;;  %v673_v16 = vpop.f32.mrf.mxu0  ;;  %v548_v11 = vld [vmem:[%s3413_s13 + $0x398] sm:$0xff] }
 0x13a   : > { %v1378_v17 = vpop.f32.mrf.mxu1 }
 0x13b   : > { %2122 = vst.msk [vmem:[%s3722_s14 + $0x20] sm:$0xff] %vm2117_vm0, %v1993_v12  ;;  %v1996_v20 = vadd.f32 %v3715_v40, %v1384_v13  ;;  %v1379_v21 = vadd.f32 %v1378_v17, %v673_v16  ;;  %v2689_v22 = vpop.f32.mrf.mxu0  ;;  %2832 = vmatmul.mubr.f32.gmra.mxu0 %v538_v14  ;;  %v404_v12 = vld [vmem:[%s3407_s6 + $0x398] sm:$0xff]  ;;  %v405_v16 = vld [vmem:[%s3407_s6 + $0x3a0] sm:$0xff] }
 0x13c   : > { %v2913_v23 = vpop.f32.mrf.mxu1  ;;  %3056 = vmatmul.mubr.f32.gmra.mxu1 %v394_v15  ;;  %2834 = vmatprep.mubr.f32.mxu0 %v539_v18  ;;  %v549_v15 = vld [vmem:[%s3413_s13 + $0x3a0] sm:$0xff] }
 0x13d   : > { %2125 = vst.msk [vmem:[%s3722_s14 + $0x38] sm:$0xff] %vm2117_vm0, %v1996_v20  ;;  %v1995_v24 = vadd.f32 %v3715_v40, %v1379_v21  ;;  %v1394_v25 = vadd.f32 %v2913_v23, %v2689_v22  ;;  %3058 = vmatprep.mubr.f32.mxu1 %v395_v19  ;;  %v683_v28 = vpop.f32.mrf.mxu0  ;;  %v550_v23 = vld [vmem:[%s3413_s13 + $0x3a8] sm:$0xff] }
 0x13e   : > { %v1388_v29 = vpop.f32.mrf.mxu1 }
 0x13f   : > { %2124 = vst.msk [vmem:[%s3722_s14 + $0x30] sm:$0xff] %vm2117_vm0, %v1995_v24  ;;  %v1998_v32 = vadd.f32 %v3715_v40, %v1394_v25  ;;  %v1389_v33 = vadd.f32 %v1388_v29, %v683_v28  ;;  %v2692_v34 = vpop.f32.mrf.mxu0  ;;  %2835 = vmatmul.mubr.f32.gmra.mxu0 %v540_v26  ;;  %v406_v24 = vld [vmem:[%s3407_s6 + $0x3a8] sm:$0xff]  ;;  %v407_v28 = vld [vmem:[%s3407_s6 + $0x3b0] sm:$0xff] }
 0x140   : > { %v2916_v35 = vpop.f32.mrf.mxu1  ;;  %3059 = vmatmul.mubr.f32.gmra.mxu1 %v396_v27  ;;  %2837 = vmatprep.mubr.f32.mxu0 %v541_v30  ;;  %v551_v27 = vld [vmem:[%s3413_s13 + $0x3b0] sm:$0xff] }
 0x141   : > { %2127 = vst.msk [vmem:[%s3722_s14 + $0x48] sm:$0xff] %vm2117_vm0, %v1998_v32  ;;  %v1997_v36 = vadd.f32 %v3715_v40, %v1389_v33  ;;  %v1404_v37 = vadd.f32 %v2916_v35, %v2692_v34  ;;  %3061 = vmatprep.mubr.f32.mxu1 %v397_v31  ;;  %v693_v41 = vpop.f32.mrf.mxu0  ;;  %v552_v35 = vld [vmem:[%s3413_s13 + $0x3b8] sm:$0xff] }
 0x142   : > { %v1398_v42 = vpop.f32.mrf.mxu1 }
 0x143   : > { %2126 = vst.msk [vmem:[%s3722_s14 + $0x40] sm:$0xff] %vm2117_vm0, %v1997_v36  ;;  %v2000_v45 = vadd.f32 %v3715_v40, %v1404_v37  ;;  %v1399_v46 = vadd.f32 %v1398_v42, %v693_v41  ;;  %v2695_v47 = vpop.f32.mrf.mxu0  ;;  %2838 = vmatmul.mubr.f32.gmra.mxu0 %v542_v38  ;;  %v408_v36 = vld [vmem:[%s3407_s6 + $0x3b8] sm:$0xff]  ;;  %v409_v41 = vld [vmem:[%s3407_s6 + $0x3c0] sm:$0xff] }
 0x144   : > { %v2919_v48 = vpop.f32.mrf.mxu1  ;;  %3062 = vmatmul.mubr.f32.gmra.mxu1 %v398_v39  ;;  %2840 = vmatprep.mubr.f32.mxu0 %v543_v43  ;;  %v553_v39 = vld [vmem:[%s3413_s13 + $0x3c0] sm:$0xff] }
 0x145   : > { %2129 = vst.msk [vmem:[%s3722_s14 + $0x58] sm:$0xff] %vm2117_vm0, %v2000_v45  ;;  %v1999_v49 = vadd.f32 %v3715_v40, %v1399_v46  ;;  %v1414_v50 = vadd.f32 %v2919_v48, %v2695_v47  ;;  %3064 = vmatprep.mubr.f32.mxu1 %v399_v44  ;;  %v703_v53 = vpop.f32.mrf.mxu0  ;;  %v554_v48 = vld [vmem:[%s3413_s13 + $0x3c8] sm:$0xff] }
 0x146   : > { %v1408_v54 = vpop.f32.mrf.mxu1 }
 0x147   : > { %2128 = vst.msk [vmem:[%s3722_s14 + $0x50] sm:$0xff] %vm2117_vm0, %v1999_v49  ;;  %v2002_v57 = vadd.f32 %v3715_v40, %v1414_v50  ;;  %v1409_v58 = vadd.f32 %v1408_v54, %v703_v53  ;;  %v2698_v59 = vpop.f32.mrf.mxu0  ;;  %2841 = vmatmul.mubr.f32.gmra.mxu0 %v544_v51  ;;  %v410_v49 = vld [vmem:[%s3407_s6 + $0x3c8] sm:$0xff]  ;;  %v411_v53 = vld [vmem:[%s3407_s6 + $0x3d0] sm:$0xff] }
 0x148   : > { %v2922_v60 = vpop.f32.mrf.mxu1  ;;  %3065 = vmatmul.mubr.f32.gmra.mxu1 %v400_v52  ;;  %2843 = vmatprep.mubr.f32.mxu0 %v545_v55  ;;  %v555_v52 = vld [vmem:[%s3413_s13 + $0x3d0] sm:$0xff] }
 0x149   : > { %2131 = vst.msk [vmem:[%s3722_s14 + $0x68] sm:$0xff] %vm2117_vm0, %v2002_v57  ;;  %v2001_v61 = vadd.f32 %v3715_v40, %v1409_v58  ;;  %v1424_v62 = vadd.f32 %v2922_v60, %v2698_v59  ;;  %3067 = vmatprep.mubr.f32.mxu1 %v401_v56  ;;  %v713_v1 = vpop.f32.mrf.mxu0  ;;  %v556_v60 = vld [vmem:[%s3413_s13 + $0x3d8] sm:$0xff] }
 0x14a   : > { %v1418_v2 = vpop.f32.mrf.mxu1 }
 0x14b   : > { %2130 = vst.msk [vmem:[%s3722_s14 + $0x60] sm:$0xff] %vm2117_vm0, %v2001_v61  ;;  %v2004_v5 = vadd.f32 %v3715_v40, %v1424_v62  ;;  %v1419_v6 = vadd.f32 %v1418_v2, %v713_v1  ;;  %v2701_v7 = vpop.f32.mrf.mxu0  ;;  %2844 = vmatmul.mubr.f32.gmra.mxu0 %v546_v63  ;;  %v412_v61 = vld [vmem:[%s3407_s6 + $0x3d8] sm:$0xff]  ;;  %v413_v1 = vld [vmem:[%s3407_s6 + $0x3e0] sm:$0xff] }
 0x14c   : > { %v2925_v8 = vpop.f32.mrf.mxu1  ;;  %3068 = vmatmul.mubr.f32.gmra.mxu1 %v402_v0  ;;  %2846 = vmatprep.mubr.f32.mxu0 %v547_v3  ;;  %v557_v0 = vld [vmem:[%s3413_s13 + $0x3e0] sm:$0xff] }
 0x14d   : > { %2133 = vst.msk [vmem:[%s3722_s14 + $0x78] sm:$0xff] %vm2117_vm0, %v2004_v5  ;;  %v2003_v9 = vadd.f32 %v3715_v40, %v1419_v6  ;;  %v1434_v10 = vadd.f32 %v2925_v8, %v2701_v7  ;;  %3070 = vmatprep.mubr.f32.mxu1 %v403_v4  ;;  %v723_v13 = vpop.f32.mrf.mxu0  ;;  %v558_v8 = vld [vmem:[%s3413_s13 + $0x3e8] sm:$0xff] }
 0x14e   : > { %v1428_v14 = vpop.f32.mrf.mxu1 }
 0x14f   : > { %2132 = vst.msk [vmem:[%s3722_s14 + $0x70] sm:$0xff] %vm2117_vm0, %v2003_v9  ;;  %v2006_v17 = vadd.f32 %v3715_v40, %v1434_v10  ;;  %v1429_v18 = vadd.f32 %v1428_v14, %v723_v13  ;;  %v2704_v19 = vpop.f32.mrf.mxu0  ;;  %2847 = vmatmul.mubr.f32.gmra.mxu0 %v548_v11  ;;  %v414_v9 = vld [vmem:[%s3407_s6 + $0x3e8] sm:$0xff]  ;;  %v415_v13 = vld [vmem:[%s3407_s6 + $0x3f0] sm:$0xff] }
 0x150   : > { %v2928_v20 = vpop.f32.mrf.mxu1  ;;  %3071 = vmatmul.mubr.f32.gmra.mxu1 %v404_v12  ;;  %2849 = vmatprep.mubr.f32.mxu0 %v549_v15  ;;  %v559_v12 = vld [vmem:[%s3413_s13 + $0x3f0] sm:$0xff] }
 0x151   : > { %2135 = vst.msk [vmem:[%s3722_s14 + $0x88] sm:$0xff] %vm2117_vm0, %v2006_v17  ;;  %v2005_v21 = vadd.f32 %v3715_v40, %v1429_v18  ;;  %v1444_v22 = vadd.f32 %v2928_v20, %v2704_v19  ;;  %3073 = vmatprep.mubr.f32.mxu1 %v405_v16  ;;  %v733_v25 = vpop.f32.mrf.mxu0  ;;  %v560_v20 = vld [vmem:[%s3413_s13 + $0x3f8] sm:$0xff] }
 0x152   : > { %v1438_v26 = vpop.f32.mrf.mxu1 }
 0x153   : > { %2134 = vst.msk [vmem:[%s3722_s14 + $0x80] sm:$0xff] %vm2117_vm0, %v2005_v21  ;;  %v2008_v29 = vadd.f32 %v3715_v40, %v1444_v22  ;;  %v1439_v30 = vadd.f32 %v1438_v26, %v733_v25  ;;  %v2707_v31 = vpop.f32.mrf.mxu0  ;;  %2850 = vmatmul.mubr.f32.gmra.mxu0 %v550_v23  ;;  %v416_v21 = vld [vmem:[%s3407_s6 + $0x3f8] sm:$0xff] }
 0x154   : > { %v2931_v32 = vpop.f32.mrf.mxu1  ;;  %3074 = vmatmul.mubr.f32.gmra.mxu1 %v406_v24  ;;  %2852 = vmatprep.mubr.f32.mxu0 %v551_v27 }
 0x155   : > { %2137 = vst.msk [vmem:[%s3722_s14 + $0x98] sm:$0xff] %vm2117_vm0, %v2008_v29  ;;  %v2007_v33 = vadd.f32 %v3715_v40, %v1439_v30  ;;  %v1454_v34 = vadd.f32 %v2931_v32, %v2707_v31  ;;  %3076 = vmatprep.mubr.f32.mxu1 %v407_v28  ;;  %v743_v37 = vpop.f32.mrf.mxu0 }
 0x156   : > { %v1448_v38 = vpop.f32.mrf.mxu1 }
 0x157   : > { %2136 = vst.msk [vmem:[%s3722_s14 + $0x90] sm:$0xff] %vm2117_vm0, %v2007_v33  ;;  %v2010_v42 = vadd.f32 %v3715_v40, %v1454_v34  ;;  %v1449_v43 = vadd.f32 %v1448_v38, %v743_v37  ;;  %v2710_v44 = vpop.f32.mrf.mxu0  ;;  %2853 = vmatmul.mubr.f32.gmra.mxu0 %v552_v35 }
 0x158   : > { %v2934_v45 = vpop.f32.mrf.mxu1  ;;  %3077 = vmatmul.mubr.f32.gmra.mxu1 %v408_v36  ;;  %2855 = vmatprep.mubr.f32.mxu0 %v553_v39 }
 0x159   : > { %2139 = vst.msk [vmem:[%s3722_s14 + $0xa8] sm:$0xff] %vm2117_vm0, %v2010_v42  ;;  %v2009_v46 = vadd.f32 %v3715_v40, %v1449_v43  ;;  %v1464_v47 = vadd.f32 %v2934_v45, %v2710_v44  ;;  %3079 = vmatprep.mubr.f32.mxu1 %v409_v41  ;;  %v753_v50 = vpop.f32.mrf.mxu0 }
 0x15a   : > { %v1458_v51 = vpop.f32.mrf.mxu1 }
 0x15b   : > { %2138 = vst.msk [vmem:[%s3722_s14 + $0xa0] sm:$0xff] %vm2117_vm0, %v2009_v46  ;;  %v2012_v54 = vadd.f32 %v3715_v40, %v1464_v47  ;;  %v1459_v55 = vadd.f32 %v1458_v51, %v753_v50  ;;  %v2713_v56 = vpop.f32.mrf.mxu0  ;;  %2856 = vmatmul.mubr.f32.gmra.mxu0 %v554_v48 }
 0x15c   : > { %v2937_v57 = vpop.f32.mrf.mxu1  ;;  %3080 = vmatmul.mubr.f32.gmra.mxu1 %v410_v49  ;;  %2858 = vmatprep.mubr.f32.mxu0 %v555_v52 }
 0x15d   : > { %2141 = vst.msk [vmem:[%s3722_s14 + $0xb8] sm:$0xff] %vm2117_vm0, %v2012_v54  ;;  %v2011_v58 = vadd.f32 %v3715_v40, %v1459_v55  ;;  %v1474_v59 = vadd.f32 %v2937_v57, %v2713_v56  ;;  %3082 = vmatprep.mubr.f32.mxu1 %v411_v53  ;;  %v763_v62 = vpop.f32.mrf.mxu0 }
 0x15e   : > { %v1468_v63 = vpop.f32.mrf.mxu1 }
 0x15f   : > { %2140 = vst.msk [vmem:[%s3722_s14 + $0xb0] sm:$0xff] %vm2117_vm0, %v2011_v58  ;;  %v2014_v2 = vadd.f32 %v3715_v40, %v1474_v59  ;;  %v1469_v3 = vadd.f32 %v1468_v63, %v763_v62  ;;  %v2716_v4 = vpop.f32.mrf.mxu0  ;;  %2859 = vmatmul.mubr.f32.gmra.mxu0 %v556_v60 }
 0x160   : > { %v2940_v5 = vpop.f32.mrf.mxu1  ;;  %3083 = vmatmul.mubr.f32.gmra.mxu1 %v412_v61  ;;  %2861 = vmatprep.mubr.f32.mxu0 %v557_v0 }
 0x161   : > { %2143 = vst.msk [vmem:[%s3722_s14 + $0xc8] sm:$0xff] %vm2117_vm0, %v2014_v2  ;;  %v2013_v6 = vadd.f32 %v3715_v40, %v1469_v3  ;;  %v1484_v7 = vadd.f32 %v2940_v5, %v2716_v4  ;;  %3085 = vmatprep.mubr.f32.mxu1 %v413_v1  ;;  %v773_v10 = vpop.f32.mrf.mxu0 }
 0x162   : > { %v1478_v11 = vpop.f32.mrf.mxu1 }
 0x163   : > { %2142 = vst.msk [vmem:[%s3722_s14 + $0xc0] sm:$0xff] %vm2117_vm0, %v2013_v6  ;;  %v2016_v14 = vadd.f32 %v3715_v40, %v1484_v7  ;;  %v1479_v15 = vadd.f32 %v1478_v11, %v773_v10  ;;  %v2719_v16 = vpop.f32.mrf.mxu0  ;;  %2862 = vmatmul.mubr.f32.gmra.mxu0 %v558_v8 }
 0x164   : > { %v2943_v17 = vpop.f32.mrf.mxu1  ;;  %3086 = vmatmul.mubr.f32.gmra.mxu1 %v414_v9  ;;  %2864 = vmatprep.mubr.f32.mxu0 %v559_v12 }
 0x165   : > { %2145 = vst.msk [vmem:[%s3722_s14 + $0xd8] sm:$0xff] %vm2117_vm0, %v2016_v14  ;;  %v2015_v18 = vadd.f32 %v3715_v40, %v1479_v15  ;;  %v1494_v19 = vadd.f32 %v2943_v17, %v2719_v16  ;;  %3088 = vmatprep.mubr.f32.mxu1 %v415_v13  ;;  %v783_v22 = vpop.f32.mrf.mxu0 }
 0x166   : > { %v1488_v23 = vpop.f32.mrf.mxu1 }
 0x167   : > { %2144 = vst.msk [vmem:[%s3722_s14 + $0xd0] sm:$0xff] %vm2117_vm0, %v2015_v18  ;;  %v2018_v24 = vadd.f32 %v3715_v40, %v1494_v19  ;;  %v1489_v25 = vadd.f32 %v1488_v23, %v783_v22  ;;  %v2722_v26 = vpop.f32.mrf.mxu0  ;;  %2865 = vmatmul.mubr.f32.gmra.mxu0 %v560_v20 }
 0x168   : > { %v2946_v27 = vpop.f32.mrf.mxu1  ;;  %3089 = vmatmul.mubr.f32.gmra.mxu1 %v416_v21 }
 0x169   : > { %2147 = vst.msk [vmem:[%s3722_s14 + $0xe8] sm:$0xff] %vm2117_vm0, %v2018_v24  ;;  %v2017_v28 = vadd.f32 %v3715_v40, %v1489_v25  ;;  %v1504_v29 = vadd.f32 %v2946_v27, %v2722_v26  ;;  %v793_v30 = vpop.f32.mrf.mxu0 }
 0x16a   : > { %v1498_v31 = vpop.f32.mrf.mxu1 }
 0x16b   : > { %2146 = vst.msk [vmem:[%s3722_s14 + $0xe0] sm:$0xff] %vm2117_vm0, %v2017_v28  ;;  %v2020_v32 = vadd.f32 %v3715_v40, %v1504_v29  ;;  %v1499_v33 = vadd.f32 %v1498_v31, %v793_v30  ;;  %v2725_v34 = vpop.f32.mrf.mxu0 }
 0x16c   : > { %v2949_v35 = vpop.f32.mrf.mxu1 }
 0x16d   : > { %2149 = vst.msk [vmem:[%s3722_s14 + $0xf8] sm:$0xff] %vm2117_vm0, %v2020_v32  ;;  %v2019_v36 = vadd.f32 %v3715_v40, %v1499_v33  ;;  %v1514_v37 = vadd.f32 %v2949_v35, %v2725_v34  ;;  %v803_v38 = vpop.f32.mrf.mxu0 }
 0x16e   : > { %v1508_v39 = vpop.f32.mrf.mxu1 }
 0x16f   : > { %2148 = vst.msk [vmem:[%s3722_s14 + $0xf0] sm:$0xff] %vm2117_vm0, %v2019_v36  ;;  %v2022_v41 = vadd.f32 %v3715_v40, %v1514_v37  ;;  %v1509_v42 = vadd.f32 %v1508_v39, %v803_v38  ;;  %v2728_v43 = vpop.f32.mrf.mxu0 }
 0x170   : > { %v2952_v44 = vpop.f32.mrf.mxu1 }
 0x171   : > { %2151 = vst.msk [vmem:[%s3722_s14 + $0x108] sm:$0xff] %vm2117_vm0, %v2022_v41  ;;  %v2021_v45 = vadd.f32 %v3715_v40, %v1509_v42  ;;  %v1524_v46 = vadd.f32 %v2952_v44, %v2728_v43  ;;  %v813_v47 = vpop.f32.mrf.mxu0 }
 0x172   : > { %v1518_v48 = vpop.f32.mrf.mxu1 }
 0x173   : > { %2150 = vst.msk [vmem:[%s3722_s14 + $0x100] sm:$0xff] %vm2117_vm0, %v2021_v45  ;;  %v2024_v49 = vadd.f32 %v3715_v40, %v1524_v46  ;;  %v1519_v50 = vadd.f32 %v1518_v48, %v813_v47  ;;  %v2731_v51 = vpop.f32.mrf.mxu0 }
 0x174   : > { %v2955_v52 = vpop.f32.mrf.mxu1 }
 0x175   : > { %2153 = vst.msk [vmem:[%s3722_s14 + $0x118] sm:$0xff] %vm2117_vm0, %v2024_v49  ;;  %v2023_v53 = vadd.f32 %v3715_v40, %v1519_v50  ;;  %v1534_v54 = vadd.f32 %v2955_v52, %v2731_v51  ;;  %v823_v55 = vpop.f32.mrf.mxu0 }
 0x176   : > { %v1528_v56 = vpop.f32.mrf.mxu1 }
 0x177   : > { %2152 = vst.msk [vmem:[%s3722_s14 + $0x110] sm:$0xff] %vm2117_vm0, %v2023_v53  ;;  %v2026_v57 = vadd.f32 %v3715_v40, %v1534_v54  ;;  %v1529_v58 = vadd.f32 %v1528_v56, %v823_v55  ;;  %v2734_v59 = vpop.f32.mrf.mxu0 }
 0x178   : > { %v2958_v60 = vpop.f32.mrf.mxu1 }
 0x179   : > { %2155 = vst.msk [vmem:[%s3722_s14 + $0x128] sm:$0xff] %vm2117_vm0, %v2026_v57  ;;  %v2025_v61 = vadd.f32 %v3715_v40, %v1529_v58  ;;  %v1544_v62 = vadd.f32 %v2958_v60, %v2734_v59  ;;  %v833_v63 = vpop.f32.mrf.mxu0 }
 0x17a   : > { %v1538_v0 = vpop.f32.mrf.mxu1 }
 0x17b   : > { %2154 = vst.msk [vmem:[%s3722_s14 + $0x120] sm:$0xff] %vm2117_vm0, %v2025_v61  ;;  %v2028_v1 = vadd.f32 %v3715_v40, %v1544_v62  ;;  %v1539_v2 = vadd.f32 %v1538_v0, %v833_v63  ;;  %v2737_v3 = vpop.f32.mrf.mxu0 }
 0x17c   : > { %v2961_v4 = vpop.f32.mrf.mxu1 }
 0x17d   : > { %2157 = vst.msk [vmem:[%s3722_s14 + $0x138] sm:$0xff] %vm2117_vm0, %v2028_v1  ;;  %v2027_v5 = vadd.f32 %v3715_v40, %v1539_v2  ;;  %v1554_v6 = vadd.f32 %v2961_v4, %v2737_v3  ;;  %v843_v7 = vpop.f32.mrf.mxu0 }
 0x17e   : > { %v1548_v8 = vpop.f32.mrf.mxu1 }
 0x17f   : > { %2156 = vst.msk [vmem:[%s3722_s14 + $0x130] sm:$0xff] %vm2117_vm0, %v2027_v5  ;;  %v2030_v9 = vadd.f32 %v3715_v40, %v1554_v6  ;;  %v1549_v10 = vadd.f32 %v1548_v8, %v843_v7  ;;  %v2740_v11 = vpop.f32.mrf.mxu0 }
 0x180   : > { %v2964_v12 = vpop.f32.mrf.mxu1 }
 0x181   : > { %2159 = vst.msk [vmem:[%s3722_s14 + $0x148] sm:$0xff] %vm2117_vm0, %v2030_v9  ;;  %v2029_v13 = vadd.f32 %v3715_v40, %v1549_v10  ;;  %v1564_v14 = vadd.f32 %v2964_v12, %v2740_v11  ;;  %v853_v15 = vpop.f32.mrf.mxu0 }
 0x182   : > { %v1558_v16 = vpop.f32.mrf.mxu1 }
 0x183   : > { %2158 = vst.msk [vmem:[%s3722_s14 + $0x140] sm:$0xff] %vm2117_vm0, %v2029_v13  ;;  %v2032_v17 = vadd.f32 %v3715_v40, %v1564_v14  ;;  %v1559_v18 = vadd.f32 %v1558_v16, %v853_v15  ;;  %v2743_v19 = vpop.f32.mrf.mxu0 }
 0x184   : > { %v2967_v20 = vpop.f32.mrf.mxu1 }
 0x185   : > { %2161 = vst.msk [vmem:[%s3722_s14 + $0x158] sm:$0xff] %vm2117_vm0, %v2032_v17  ;;  %v2031_v21 = vadd.f32 %v3715_v40, %v1559_v18  ;;  %v1574_v22 = vadd.f32 %v2967_v20, %v2743_v19  ;;  %v863_v23 = vpop.f32.mrf.mxu0 }
 0x186   : > { %v1568_v24 = vpop.f32.mrf.mxu1 }
 0x187   : > { %2160 = vst.msk [vmem:[%s3722_s14 + $0x150] sm:$0xff] %vm2117_vm0, %v2031_v21  ;;  %v2034_v25 = vadd.f32 %v3715_v40, %v1574_v22  ;;  %v1569_v26 = vadd.f32 %v1568_v24, %v863_v23  ;;  %v2746_v27 = vpop.f32.mrf.mxu0 }
 0x188   : > { %v2970_v28 = vpop.f32.mrf.mxu1 }
 0x189   : > { %2163 = vst.msk [vmem:[%s3722_s14 + $0x168] sm:$0xff] %vm2117_vm0, %v2034_v25  ;;  %v2033_v29 = vadd.f32 %v3715_v40, %v1569_v26  ;;  %v1584_v30 = vadd.f32 %v2970_v28, %v2746_v27  ;;  %v873_v31 = vpop.f32.mrf.mxu0 }
 0x18a   : > { %v1578_v32 = vpop.f32.mrf.mxu1 }
 0x18b   : > { %2162 = vst.msk [vmem:[%s3722_s14 + $0x160] sm:$0xff] %vm2117_vm0, %v2033_v29  ;;  %v2036_v33 = vadd.f32 %v3715_v40, %v1584_v30  ;;  %v1579_v34 = vadd.f32 %v1578_v32, %v873_v31  ;;  %v2749_v35 = vpop.f32.mrf.mxu0 }
 0x18c   : > { %v2973_v36 = vpop.f32.mrf.mxu1 }
 0x18d   : > { %2165 = vst.msk [vmem:[%s3722_s14 + $0x178] sm:$0xff] %vm2117_vm0, %v2036_v33  ;;  %v2035_v37 = vadd.f32 %v3715_v40, %v1579_v34  ;;  %v1594_v38 = vadd.f32 %v2973_v36, %v2749_v35  ;;  %v883_v39 = vpop.f32.mrf.mxu0 }
 0x18e   : > { %v1588_v41 = vpop.f32.mrf.mxu1 }
 0x18f   : > { %2164 = vst.msk [vmem:[%s3722_s14 + $0x170] sm:$0xff] %vm2117_vm0, %v2035_v37  ;;  %v2038_v42 = vadd.f32 %v3715_v40, %v1594_v38  ;;  %v1589_v43 = vadd.f32 %v1588_v41, %v883_v39  ;;  %v2752_v44 = vpop.f32.mrf.mxu0 }
 0x190   : > { %v2976_v45 = vpop.f32.mrf.mxu1 }
 0x191   : > { %2167 = vst.msk [vmem:[%s3722_s14 + $0x188] sm:$0xff] %vm2117_vm0, %v2038_v42  ;;  %v2037_v46 = vadd.f32 %v3715_v40, %v1589_v43  ;;  %v1604_v47 = vadd.f32 %v2976_v45, %v2752_v44  ;;  %v893_v48 = vpop.f32.mrf.mxu0 }
 0x192   : > { %v1598_v49 = vpop.f32.mrf.mxu1 }
 0x193   : > { %2166 = vst.msk [vmem:[%s3722_s14 + $0x180] sm:$0xff] %vm2117_vm0, %v2037_v46  ;;  %v2040_v50 = vadd.f32 %v3715_v40, %v1604_v47  ;;  %v1599_v51 = vadd.f32 %v1598_v49, %v893_v48  ;;  %v2755_v52 = vpop.f32.mrf.mxu0 }
 0x194   : > { %v2979_v53 = vpop.f32.mrf.mxu1 }
 0x195   : > { %2169 = vst.msk [vmem:[%s3722_s14 + $0x198] sm:$0xff] %vm2117_vm0, %v2040_v50  ;;  %v2039_v54 = vadd.f32 %v3715_v40, %v1599_v51  ;;  %v1614_v55 = vadd.f32 %v2979_v53, %v2755_v52  ;;  %v903_v56 = vpop.f32.mrf.mxu0 }
 0x196   : > { %v1608_v57 = vpop.f32.mrf.mxu1 }
 0x197   : > { %2168 = vst.msk [vmem:[%s3722_s14 + $0x190] sm:$0xff] %vm2117_vm0, %v2039_v54  ;;  %v2042_v58 = vadd.f32 %v3715_v40, %v1614_v55  ;;  %v1609_v59 = vadd.f32 %v1608_v57, %v903_v56  ;;  %v2758_v60 = vpop.f32.mrf.mxu0 }
 0x198   : > { %v2982_v61 = vpop.f32.mrf.mxu1 }
 0x199   : > { %2171 = vst.msk [vmem:[%s3722_s14 + $0x1a8] sm:$0xff] %vm2117_vm0, %v2042_v58  ;;  %v2041_v62 = vadd.f32 %v3715_v40, %v1609_v59  ;;  %v1624_v63 = vadd.f32 %v2982_v61, %v2758_v60  ;;  %v913_v0 = vpop.f32.mrf.mxu0 }
 0x19a   : > { %v1618_v1 = vpop.f32.mrf.mxu1 }
 0x19b   : > { %2170 = vst.msk [vmem:[%s3722_s14 + $0x1a0] sm:$0xff] %vm2117_vm0, %v2041_v62  ;;  %v2044_v2 = vadd.f32 %v3715_v40, %v1624_v63  ;;  %v1619_v3 = vadd.f32 %v1618_v1, %v913_v0  ;;  %v2761_v4 = vpop.f32.mrf.mxu0 }
 0x19c   : > { %v2985_v5 = vpop.f32.mrf.mxu1 }
 0x19d   : > { %2173 = vst.msk [vmem:[%s3722_s14 + $0x1b8] sm:$0xff] %vm2117_vm0, %v2044_v2  ;;  %v2043_v6 = vadd.f32 %v3715_v40, %v1619_v3  ;;  %v1634_v7 = vadd.f32 %v2985_v5, %v2761_v4  ;;  %v923_v8 = vpop.f32.mrf.mxu0 }
 0x19e   : > { %v1628_v9 = vpop.f32.mrf.mxu1 }
 0x19f   : > { %2172 = vst.msk [vmem:[%s3722_s14 + $0x1b0] sm:$0xff] %vm2117_vm0, %v2043_v6  ;;  %v2046_v10 = vadd.f32 %v3715_v40, %v1634_v7  ;;  %v1629_v11 = vadd.f32 %v1628_v9, %v923_v8  ;;  %v2764_v12 = vpop.f32.mrf.mxu0 }
 0x1a0   : > { %v2988_v13 = vpop.f32.mrf.mxu1 }
 0x1a1   : > { %2175 = vst.msk [vmem:[%s3722_s14 + $0x1c8] sm:$0xff] %vm2117_vm0, %v2046_v10  ;;  %v2045_v14 = vadd.f32 %v3715_v40, %v1629_v11  ;;  %v1644_v15 = vadd.f32 %v2988_v13, %v2764_v12  ;;  %v933_v16 = vpop.f32.mrf.mxu0 }
 0x1a2   : > { %v1638_v17 = vpop.f32.mrf.mxu1 }
 0x1a3   : > { %2174 = vst.msk [vmem:[%s3722_s14 + $0x1c0] sm:$0xff] %vm2117_vm0, %v2045_v14  ;;  %v2048_v18 = vadd.f32 %v3715_v40, %v1644_v15  ;;  %v1639_v19 = vadd.f32 %v1638_v17, %v933_v16  ;;  %v2767_v20 = vpop.f32.mrf.mxu0 }
 0x1a4   : > { %v2991_v21 = vpop.f32.mrf.mxu1 }
 0x1a5   : > { %2177 = vst.msk [vmem:[%s3722_s14 + $0x1d8] sm:$0xff] %vm2117_vm0, %v2048_v18  ;;  %v2047_v22 = vadd.f32 %v3715_v40, %v1639_v19  ;;  %v1654_v23 = vadd.f32 %v2991_v21, %v2767_v20  ;;  %v943_v24 = vpop.f32.mrf.mxu0 }
 0x1a6   : > { %v1648_v25 = vpop.f32.mrf.mxu1 }
 0x1a7   : > { %2176 = vst.msk [vmem:[%s3722_s14 + $0x1d0] sm:$0xff] %vm2117_vm0, %v2047_v22  ;;  %v2050_v26 = vadd.f32 %v3715_v40, %v1654_v23  ;;  %v1649_v27 = vadd.f32 %v1648_v25, %v943_v24  ;;  %v2770_v28 = vpop.f32.mrf.mxu0 }
 0x1a8   : > { %v2994_v29 = vpop.f32.mrf.mxu1 }
 0x1a9   : > { %2179 = vst.msk [vmem:[%s3722_s14 + $0x1e8] sm:$0xff] %vm2117_vm0, %v2050_v26  ;;  %v2049_v30 = vadd.f32 %v3715_v40, %v1649_v27  ;;  %v1664_v31 = vadd.f32 %v2994_v29, %v2770_v28  ;;  %v953_v32 = vpop.f32.mrf.mxu0 }
 0x1aa   : > { %v1658_v33 = vpop.f32.mrf.mxu1 }
 0x1ab   : > { %2178 = vst.msk [vmem:[%s3722_s14 + $0x1e0] sm:$0xff] %vm2117_vm0, %v2049_v30  ;;  %v2052_v34 = vadd.f32 %v3715_v40, %v1664_v31  ;;  %v1659_v35 = vadd.f32 %v1658_v33, %v953_v32  ;;  %v2773_v36 = vpop.f32.mrf.mxu0 }
 0x1ac   : > { %v2997_v37 = vpop.f32.mrf.mxu1 }
 0x1ad   : > { %2181 = vst.msk [vmem:[%s3722_s14 + $0x1f8] sm:$0xff] %vm2117_vm0, %v2052_v34  ;;  %v2051_v38 = vadd.f32 %v3715_v40, %v1659_v35  ;;  %v1674_v39 = vadd.f32 %v2997_v37, %v2773_v36  ;;  %v963_v41 = vpop.f32.mrf.mxu0 }
 0x1ae   : > { %v1668_v42 = vpop.f32.mrf.mxu1 }
 0x1af   : > { %2180 = vst.msk [vmem:[%s3722_s14 + $0x1f0] sm:$0xff] %vm2117_vm0, %v2051_v38  ;;  %v2054_v43 = vadd.f32 %v3715_v40, %v1674_v39  ;;  %v1669_v44 = vadd.f32 %v1668_v42, %v963_v41  ;;  %v2776_v45 = vpop.f32.mrf.mxu0 }
 0x1b0   : > { %v3000_v46 = vpop.f32.mrf.mxu1 }
 0x1b1   : > { %2183 = vst.msk [vmem:[%s3722_s14 + $0x208] sm:$0xff] %vm2117_vm0, %v2054_v43  ;;  %v2053_v47 = vadd.f32 %v3715_v40, %v1669_v44  ;;  %v1684_v48 = vadd.f32 %v3000_v46, %v2776_v45  ;;  %v973_v49 = vpop.f32.mrf.mxu0 }
 0x1b2   : > { %v1678_v50 = vpop.f32.mrf.mxu1 }
 0x1b3   : > { %2182 = vst.msk [vmem:[%s3722_s14 + $0x200] sm:$0xff] %vm2117_vm0, %v2053_v47  ;;  %v2056_v51 = vadd.f32 %v3715_v40, %v1684_v48  ;;  %v1679_v52 = vadd.f32 %v1678_v50, %v973_v49  ;;  %v2779_v53 = vpop.f32.mrf.mxu0 }
 0x1b4   : > { %v3003_v54 = vpop.f32.mrf.mxu1 }
 0x1b5   : > { %2185 = vst.msk [vmem:[%s3722_s14 + $0x218] sm:$0xff] %vm2117_vm0, %v2056_v51  ;;  %v2055_v55 = vadd.f32 %v3715_v40, %v1679_v52  ;;  %v1694_v56 = vadd.f32 %v3003_v54, %v2779_v53  ;;  %v983_v57 = vpop.f32.mrf.mxu0 }
 0x1b6   : > { %v1688_v58 = vpop.f32.mrf.mxu1 }
 0x1b7   : > { %2184 = vst.msk [vmem:[%s3722_s14 + $0x210] sm:$0xff] %vm2117_vm0, %v2055_v55  ;;  %v2058_v59 = vadd.f32 %v3715_v40, %v1694_v56  ;;  %v1689_v60 = vadd.f32 %v1688_v58, %v983_v57  ;;  %v2782_v61 = vpop.f32.mrf.mxu0 }
 0x1b8   : > { %v3006_v62 = vpop.f32.mrf.mxu1 }
 0x1b9   : > { %2187 = vst.msk [vmem:[%s3722_s14 + $0x228] sm:$0xff] %vm2117_vm0, %v2058_v59  ;;  %v2057_v63 = vadd.f32 %v3715_v40, %v1689_v60  ;;  %v1704_v0 = vadd.f32 %v3006_v62, %v2782_v61  ;;  %v993_v1 = vpop.f32.mrf.mxu0 }
 0x1ba   : > { %v1698_v2 = vpop.f32.mrf.mxu1 }
 0x1bb   : > { %2186 = vst.msk [vmem:[%s3722_s14 + $0x220] sm:$0xff] %vm2117_vm0, %v2057_v63  ;;  %v2060_v3 = vadd.f32 %v3715_v40, %v1704_v0  ;;  %v1699_v4 = vadd.f32 %v1698_v2, %v993_v1  ;;  %v2785_v5 = vpop.f32.mrf.mxu0 }
 0x1bc   : > { %v3009_v6 = vpop.f32.mrf.mxu1 }
 0x1bd   : > { %2189 = vst.msk [vmem:[%s3722_s14 + $0x238] sm:$0xff] %vm2117_vm0, %v2060_v3  ;;  %v2059_v7 = vadd.f32 %v3715_v40, %v1699_v4  ;;  %v1714_v8 = vadd.f32 %v3009_v6, %v2785_v5  ;;  %v1003_v9 = vpop.f32.mrf.mxu0 }
 0x1be   : > { %v1708_v10 = vpop.f32.mrf.mxu1 }
 0x1bf   : > { %2188 = vst.msk [vmem:[%s3722_s14 + $0x230] sm:$0xff] %vm2117_vm0, %v2059_v7  ;;  %v2062_v11 = vadd.f32 %v3715_v40, %v1714_v8  ;;  %v1709_v12 = vadd.f32 %v1708_v10, %v1003_v9  ;;  %v2788_v13 = vpop.f32.mrf.mxu0 }
 0x1c0   : > { %v3012_v14 = vpop.f32.mrf.mxu1 }
 0x1c1   : > { %2191 = vst.msk [vmem:[%s3722_s14 + $0x248] sm:$0xff] %vm2117_vm0, %v2062_v11  ;;  %v2061_v15 = vadd.f32 %v3715_v40, %v1709_v12  ;;  %v1724_v16 = vadd.f32 %v3012_v14, %v2788_v13  ;;  %v1013_v17 = vpop.f32.mrf.mxu0 }
 0x1c2   : > { %v1718_v18 = vpop.f32.mrf.mxu1 }
 0x1c3   : > { %2190 = vst.msk [vmem:[%s3722_s14 + $0x240] sm:$0xff] %vm2117_vm0, %v2061_v15  ;;  %v2064_v19 = vadd.f32 %v3715_v40, %v1724_v16  ;;  %v1719_v20 = vadd.f32 %v1718_v18, %v1013_v17  ;;  %v2791_v21 = vpop.f32.mrf.mxu0 }
 0x1c4   : > { %v3015_v22 = vpop.f32.mrf.mxu1 }
 0x1c5   : > { %2193 = vst.msk [vmem:[%s3722_s14 + $0x258] sm:$0xff] %vm2117_vm0, %v2064_v19  ;;  %v2063_v23 = vadd.f32 %v3715_v40, %v1719_v20  ;;  %v1734_v24 = vadd.f32 %v3015_v22, %v2791_v21  ;;  %v1023_v25 = vpop.f32.mrf.mxu0 }
 0x1c6   : > { %v1728_v26 = vpop.f32.mrf.mxu1 }
 0x1c7   : > { %2192 = vst.msk [vmem:[%s3722_s14 + $0x250] sm:$0xff] %vm2117_vm0, %v2063_v23  ;;  %v2066_v27 = vadd.f32 %v3715_v40, %v1734_v24  ;;  %v1729_v28 = vadd.f32 %v1728_v26, %v1023_v25  ;;  %v2794_v29 = vpop.f32.mrf.mxu0 }
 0x1c8   : > { %v3018_v30 = vpop.f32.mrf.mxu1 }
 0x1c9   : > { %2195 = vst.msk [vmem:[%s3722_s14 + $0x268] sm:$0xff] %vm2117_vm0, %v2066_v27  ;;  %v2065_v31 = vadd.f32 %v3715_v40, %v1729_v28  ;;  %v1744_v32 = vadd.f32 %v3018_v30, %v2794_v29  ;;  %v1033_v33 = vpop.f32.mrf.mxu0 }
 0x1ca   : > { %v1738_v34 = vpop.f32.mrf.mxu1 }
 0x1cb   : > { %2194 = vst.msk [vmem:[%s3722_s14 + $0x260] sm:$0xff] %vm2117_vm0, %v2065_v31  ;;  %v2068_v35 = vadd.f32 %v3715_v40, %v1744_v32  ;;  %v1739_v36 = vadd.f32 %v1738_v34, %v1033_v33  ;;  %v2797_v37 = vpop.f32.mrf.mxu0 }
 0x1cc   : > { %v3021_v38 = vpop.f32.mrf.mxu1 }
 0x1cd   : > { %2197 = vst.msk [vmem:[%s3722_s14 + $0x278] sm:$0xff] %vm2117_vm0, %v2068_v35  ;;  %v2067_v39 = vadd.f32 %v3715_v40, %v1739_v36  ;;  %v1754_v41 = vadd.f32 %v3021_v38, %v2797_v37  ;;  %v1043_v42 = vpop.f32.mrf.mxu0 }
 0x1ce   : > { %v1748_v43 = vpop.f32.mrf.mxu1 }
 0x1cf   : > { %2196 = vst.msk [vmem:[%s3722_s14 + $0x270] sm:$0xff] %vm2117_vm0, %v2067_v39  ;;  %v2070_v44 = vadd.f32 %v3715_v40, %v1754_v41  ;;  %v1749_v45 = vadd.f32 %v1748_v43, %v1043_v42  ;;  %v2800_v46 = vpop.f32.mrf.mxu0 }
 0x1d0   : > { %v3024_v47 = vpop.f32.mrf.mxu1 }
 0x1d1   : > { %2199 = vst.msk [vmem:[%s3722_s14 + $0x288] sm:$0xff] %vm2117_vm0, %v2070_v44  ;;  %v2069_v48 = vadd.f32 %v3715_v40, %v1749_v45  ;;  %v1764_v49 = vadd.f32 %v3024_v47, %v2800_v46  ;;  %v1053_v50 = vpop.f32.mrf.mxu0 }
 0x1d2   : > { %v1758_v51 = vpop.f32.mrf.mxu1 }
 0x1d3   : > { %2198 = vst.msk [vmem:[%s3722_s14 + $0x280] sm:$0xff] %vm2117_vm0, %v2069_v48  ;;  %v2072_v52 = vadd.f32 %v3715_v40, %v1764_v49  ;;  %v1759_v53 = vadd.f32 %v1758_v51, %v1053_v50  ;;  %v2803_v54 = vpop.f32.mrf.mxu0 }
 0x1d4   : > { %v3027_v55 = vpop.f32.mrf.mxu1 }
 0x1d5   : > { %2201 = vst.msk [vmem:[%s3722_s14 + $0x298] sm:$0xff] %vm2117_vm0, %v2072_v52  ;;  %v2071_v56 = vadd.f32 %v3715_v40, %v1759_v53  ;;  %v1774_v57 = vadd.f32 %v3027_v55, %v2803_v54  ;;  %v1063_v58 = vpop.f32.mrf.mxu0 }
 0x1d6   : > { %v1768_v59 = vpop.f32.mrf.mxu1 }
 0x1d7   : > { %2200 = vst.msk [vmem:[%s3722_s14 + $0x290] sm:$0xff] %vm2117_vm0, %v2071_v56  ;;  %v2074_v60 = vadd.f32 %v3715_v40, %v1774_v57  ;;  %v1769_v61 = vadd.f32 %v1768_v59, %v1063_v58  ;;  %v2806_v62 = vpop.f32.mrf.mxu0 }
 0x1d8   : > { %v3030_v63 = vpop.f32.mrf.mxu1 }
 0x1d9   : > { %2203 = vst.msk [vmem:[%s3722_s14 + $0x2a8] sm:$0xff] %vm2117_vm0, %v2074_v60  ;;  %v2073_v0 = vadd.f32 %v3715_v40, %v1769_v61  ;;  %v1784_v1 = vadd.f32 %v3030_v63, %v2806_v62  ;;  %v1073_v2 = vpop.f32.mrf.mxu0 }
 0x1da   : > { %v1778_v3 = vpop.f32.mrf.mxu1 }
 0x1db   : > { %2202 = vst.msk [vmem:[%s3722_s14 + $0x2a0] sm:$0xff] %vm2117_vm0, %v2073_v0  ;;  %v2076_v4 = vadd.f32 %v3715_v40, %v1784_v1  ;;  %v1779_v5 = vadd.f32 %v1778_v3, %v1073_v2  ;;  %v2809_v6 = vpop.f32.mrf.mxu0 }
 0x1dc   : > { %v3033_v7 = vpop.f32.mrf.mxu1 }
 0x1dd   : > { %2205 = vst.msk [vmem:[%s3722_s14 + $0x2b8] sm:$0xff] %vm2117_vm0, %v2076_v4  ;;  %v2075_v8 = vadd.f32 %v3715_v40, %v1779_v5  ;;  %v1794_v9 = vadd.f32 %v3033_v7, %v2809_v6  ;;  %v1083_v10 = vpop.f32.mrf.mxu0 }
 0x1de   : > { %v1788_v11 = vpop.f32.mrf.mxu1 }
 0x1df   : > { %2204 = vst.msk [vmem:[%s3722_s14 + $0x2b0] sm:$0xff] %vm2117_vm0, %v2075_v8  ;;  %v2078_v12 = vadd.f32 %v3715_v40, %v1794_v9  ;;  %v1789_v13 = vadd.f32 %v1788_v11, %v1083_v10  ;;  %v2812_v14 = vpop.f32.mrf.mxu0 }
 0x1e0   : > { %v3036_v15 = vpop.f32.mrf.mxu1 }
 0x1e1   : > { %2207 = vst.msk [vmem:[%s3722_s14 + $0x2c8] sm:$0xff] %vm2117_vm0, %v2078_v12  ;;  %v2077_v16 = vadd.f32 %v3715_v40, %v1789_v13  ;;  %v1804_v17 = vadd.f32 %v3036_v15, %v2812_v14  ;;  %v1093_v18 = vpop.f32.mrf.mxu0 }
 0x1e2   : > { %v1798_v19 = vpop.f32.mrf.mxu1 }
 0x1e3   : > { %2206 = vst.msk [vmem:[%s3722_s14 + $0x2c0] sm:$0xff] %vm2117_vm0, %v2077_v16  ;;  %v2080_v20 = vadd.f32 %v3715_v40, %v1804_v17  ;;  %v1799_v21 = vadd.f32 %v1798_v19, %v1093_v18  ;;  %v2815_v22 = vpop.f32.mrf.mxu0 }
 0x1e4   : > { %v3039_v23 = vpop.f32.mrf.mxu1 }
 0x1e5   : > { %2209 = vst.msk [vmem:[%s3722_s14 + $0x2d8] sm:$0xff] %vm2117_vm0, %v2080_v20  ;;  %v2079_v24 = vadd.f32 %v3715_v40, %v1799_v21  ;;  %v1814_v25 = vadd.f32 %v3039_v23, %v2815_v22  ;;  %v1103_v26 = vpop.f32.mrf.mxu0 }
 0x1e6   : > { %v1808_v27 = vpop.f32.mrf.mxu1 }
 0x1e7   : > { %2208 = vst.msk [vmem:[%s3722_s14 + $0x2d0] sm:$0xff] %vm2117_vm0, %v2079_v24  ;;  %v2082_v28 = vadd.f32 %v3715_v40, %v1814_v25  ;;  %v1809_v29 = vadd.f32 %v1808_v27, %v1103_v26  ;;  %v2818_v30 = vpop.f32.mrf.mxu0 }
 0x1e8   : > { %v3042_v31 = vpop.f32.mrf.mxu1 }
 0x1e9   : > { %2211 = vst.msk [vmem:[%s3722_s14 + $0x2e8] sm:$0xff] %vm2117_vm0, %v2082_v28  ;;  %v2081_v32 = vadd.f32 %v3715_v40, %v1809_v29  ;;  %v1824_v33 = vadd.f32 %v3042_v31, %v2818_v30  ;;  %v1113_v34 = vpop.f32.mrf.mxu0 }
 0x1ea   : > { %v1818_v35 = vpop.f32.mrf.mxu1 }
 0x1eb   : > { %2210 = vst.msk [vmem:[%s3722_s14 + $0x2e0] sm:$0xff] %vm2117_vm0, %v2081_v32  ;;  %v2084_v36 = vadd.f32 %v3715_v40, %v1824_v33  ;;  %v1819_v37 = vadd.f32 %v1818_v35, %v1113_v34  ;;  %v2821_v38 = vpop.f32.mrf.mxu0 }
 0x1ec   : > { %v3045_v39 = vpop.f32.mrf.mxu1 }
 0x1ed   : > { %2213 = vst.msk [vmem:[%s3722_s14 + $0x2f8] sm:$0xff] %vm2117_vm0, %v2084_v36  ;;  %v2083_v41 = vadd.f32 %v3715_v40, %v1819_v37  ;;  %v1834_v42 = vadd.f32 %v3045_v39, %v2821_v38  ;;  %v1123_v43 = vpop.f32.mrf.mxu0 }
 0x1ee   : > { %v1828_v44 = vpop.f32.mrf.mxu1 }
 0x1ef   : > { %2212 = vst.msk [vmem:[%s3722_s14 + $0x2f0] sm:$0xff] %vm2117_vm0, %v2083_v41  ;;  %v2086_v45 = vadd.f32 %v3715_v40, %v1834_v42  ;;  %v1829_v46 = vadd.f32 %v1828_v44, %v1123_v43  ;;  %v2824_v47 = vpop.f32.mrf.mxu0 }
 0x1f0   : > { %v3048_v48 = vpop.f32.mrf.mxu1 }
 0x1f1   : > { %2215 = vst.msk [vmem:[%s3722_s14 + $0x308] sm:$0xff] %vm2117_vm0, %v2086_v45  ;;  %v2085_v49 = vadd.f32 %v3715_v40, %v1829_v46  ;;  %v1844_v50 = vadd.f32 %v3048_v48, %v2824_v47  ;;  %v1133_v51 = vpop.f32.mrf.mxu0 }
 0x1f2   : > { %v1838_v52 = vpop.f32.mrf.mxu1 }
 0x1f3   : > { %2214 = vst.msk [vmem:[%s3722_s14 + $0x300] sm:$0xff] %vm2117_vm0, %v2085_v49  ;;  %v2088_v53 = vadd.f32 %v3715_v40, %v1844_v50  ;;  %v1839_v54 = vadd.f32 %v1838_v52, %v1133_v51  ;;  %v2827_v55 = vpop.f32.mrf.mxu0 }
 0x1f4   : > { %v3051_v56 = vpop.f32.mrf.mxu1 }
 0x1f5   : > { %2217 = vst.msk [vmem:[%s3722_s14 + $0x318] sm:$0xff] %vm2117_vm0, %v2088_v53  ;;  %v2087_v57 = vadd.f32 %v3715_v40, %v1839_v54  ;;  %v1854_v58 = vadd.f32 %v3051_v56, %v2827_v55  ;;  %v1143_v59 = vpop.f32.mrf.mxu0 }
 0x1f6   : > { %v1848_v60 = vpop.f32.mrf.mxu1 }
 0x1f7   : > { %2216 = vst.msk [vmem:[%s3722_s14 + $0x310] sm:$0xff] %vm2117_vm0, %v2087_v57  ;;  %v2090_v61 = vadd.f32 %v3715_v40, %v1854_v58  ;;  %v1849_v62 = vadd.f32 %v1848_v60, %v1143_v59  ;;  %v2830_v63 = vpop.f32.mrf.mxu0 }
 0x1f8   : > { %v3054_v0 = vpop.f32.mrf.mxu1 }
 0x1f9   : > { %2219 = vst.msk [vmem:[%s3722_s14 + $0x328] sm:$0xff] %vm2117_vm0, %v2090_v61  ;;  %v2089_v1 = vadd.f32 %v3715_v40, %v1849_v62  ;;  %v1864_v2 = vadd.f32 %v3054_v0, %v2830_v63  ;;  %v1153_v3 = vpop.f32.mrf.mxu0 }
 0x1fa   : > { %v1858_v4 = vpop.f32.mrf.mxu1 }
 0x1fb   : > { %2218 = vst.msk [vmem:[%s3722_s14 + $0x320] sm:$0xff] %vm2117_vm0, %v2089_v1  ;;  %v2092_v5 = vadd.f32 %v3715_v40, %v1864_v2  ;;  %v1859_v6 = vadd.f32 %v1858_v4, %v1153_v3  ;;  %v2833_v7 = vpop.f32.mrf.mxu0 }
 0x1fc   : > { %v3057_v8 = vpop.f32.mrf.mxu1 }
 0x1fd   : > { %2221 = vst.msk [vmem:[%s3722_s14 + $0x338] sm:$0xff] %vm2117_vm0, %v2092_v5  ;;  %v2091_v9 = vadd.f32 %v3715_v40, %v1859_v6  ;;  %v1874_v10 = vadd.f32 %v3057_v8, %v2833_v7  ;;  %v1163_v11 = vpop.f32.mrf.mxu0 }
 0x1fe   : > { %v1868_v12 = vpop.f32.mrf.mxu1 }
 0x1ff   : > { %2220 = vst.msk [vmem:[%s3722_s14 + $0x330] sm:$0xff] %vm2117_vm0, %v2091_v9  ;;  %v2094_v13 = vadd.f32 %v3715_v40, %v1874_v10  ;;  %v1869_v14 = vadd.f32 %v1868_v12, %v1163_v11  ;;  %v2836_v15 = vpop.f32.mrf.mxu0 }
 0x200   : > { %v3060_v16 = vpop.f32.mrf.mxu1 }
 0x201   : > { %2223 = vst.msk [vmem:[%s3722_s14 + $0x348] sm:$0xff] %vm2117_vm0, %v2094_v13  ;;  %v2093_v17 = vadd.f32 %v3715_v40, %v1869_v14  ;;  %v1884_v18 = vadd.f32 %v3060_v16, %v2836_v15  ;;  %v1173_v19 = vpop.f32.mrf.mxu0 }
 0x202   : > { %v1878_v20 = vpop.f32.mrf.mxu1 }
 0x203   : > { %2222 = vst.msk [vmem:[%s3722_s14 + $0x340] sm:$0xff] %vm2117_vm0, %v2093_v17  ;;  %v2096_v21 = vadd.f32 %v3715_v40, %v1884_v18  ;;  %v1879_v22 = vadd.f32 %v1878_v20, %v1173_v19  ;;  %v2839_v23 = vpop.f32.mrf.mxu0 }
 0x204   : > { %v3063_v24 = vpop.f32.mrf.mxu1 }
 0x205   : > { %2225 = vst.msk [vmem:[%s3722_s14 + $0x358] sm:$0xff] %vm2117_vm0, %v2096_v21  ;;  %v2095_v25 = vadd.f32 %v3715_v40, %v1879_v22  ;;  %v1894_v26 = vadd.f32 %v3063_v24, %v2839_v23  ;;  %v1183_v27 = vpop.f32.mrf.mxu0 }
 0x206   : > { %v1888_v28 = vpop.f32.mrf.mxu1 }
 0x207   : > { %2224 = vst.msk [vmem:[%s3722_s14 + $0x350] sm:$0xff] %vm2117_vm0, %v2095_v25  ;;  %v2098_v29 = vadd.f32 %v3715_v40, %v1894_v26  ;;  %v1889_v30 = vadd.f32 %v1888_v28, %v1183_v27  ;;  %v2842_v31 = vpop.f32.mrf.mxu0 }
 0x208   : > { %v3066_v32 = vpop.f32.mrf.mxu1 }
 0x209   : > { %2227 = vst.msk [vmem:[%s3722_s14 + $0x368] sm:$0xff] %vm2117_vm0, %v2098_v29  ;;  %v2097_v33 = vadd.f32 %v3715_v40, %v1889_v30  ;;  %v1904_v34 = vadd.f32 %v3066_v32, %v2842_v31  ;;  %v1193_v35 = vpop.f32.mrf.mxu0 }
 0x20a   : > { %v1898_v36 = vpop.f32.mrf.mxu1 }
 0x20b   : > { %2226 = vst.msk [vmem:[%s3722_s14 + $0x360] sm:$0xff] %vm2117_vm0, %v2097_v33  ;;  %v2100_v37 = vadd.f32 %v3715_v40, %v1904_v34  ;;  %v1899_v38 = vadd.f32 %v1898_v36, %v1193_v35  ;;  %v2845_v39 = vpop.f32.mrf.mxu0 }
 0x20c   : > { %v3069_v41 = vpop.f32.mrf.mxu1 }
 0x20d   : > { %2229 = vst.msk [vmem:[%s3722_s14 + $0x378] sm:$0xff] %vm2117_vm0, %v2100_v37  ;;  %v2099_v42 = vadd.f32 %v3715_v40, %v1899_v38  ;;  %v1914_v43 = vadd.f32 %v3069_v41, %v2845_v39  ;;  %v1203_v44 = vpop.f32.mrf.mxu0 }
 0x20e   : > { %v1908_v45 = vpop.f32.mrf.mxu1 }
 0x20f   : > { %2228 = vst.msk [vmem:[%s3722_s14 + $0x370] sm:$0xff] %vm2117_vm0, %v2099_v42  ;;  %v2102_v46 = vadd.f32 %v3715_v40, %v1914_v43  ;;  %v1909_v47 = vadd.f32 %v1908_v45, %v1203_v44  ;;  %v2848_v48 = vpop.f32.mrf.mxu0 }
 0x210   : > { %v3072_v49 = vpop.f32.mrf.mxu1 }
 0x211   : > { %2231 = vst.msk [vmem:[%s3722_s14 + $0x388] sm:$0xff] %vm2117_vm0, %v2102_v46  ;;  %v2101_v50 = vadd.f32 %v3715_v40, %v1909_v47  ;;  %v1924_v51 = vadd.f32 %v3072_v49, %v2848_v48  ;;  %v1213_v52 = vpop.f32.mrf.mxu0 }
 0x212   : > { %v1918_v53 = vpop.f32.mrf.mxu1 }
 0x213   : > { %2230 = vst.msk [vmem:[%s3722_s14 + $0x380] sm:$0xff] %vm2117_vm0, %v2101_v50  ;;  %v2104_v54 = vadd.f32 %v3715_v40, %v1924_v51  ;;  %v1919_v55 = vadd.f32 %v1918_v53, %v1213_v52  ;;  %v2851_v56 = vpop.f32.mrf.mxu0 }
 0x214   : > { %v3075_v57 = vpop.f32.mrf.mxu1 }
 0x215   : > { %2233 = vst.msk [vmem:[%s3722_s14 + $0x398] sm:$0xff] %vm2117_vm0, %v2104_v54  ;;  %v2103_v58 = vadd.f32 %v3715_v40, %v1919_v55  ;;  %v1934_v59 = vadd.f32 %v3075_v57, %v2851_v56  ;;  %v1223_v60 = vpop.f32.mrf.mxu0 }
 0x216   : > { %v1928_v61 = vpop.f32.mrf.mxu1 }
 0x217   : > { %2232 = vst.msk [vmem:[%s3722_s14 + $0x390] sm:$0xff] %vm2117_vm0, %v2103_v58  ;;  %v2106_v62 = vadd.f32 %v3715_v40, %v1934_v59  ;;  %v1929_v63 = vadd.f32 %v1928_v61, %v1223_v60  ;;  %v2854_v0 = vpop.f32.mrf.mxu0 }
 0x218   : > { %v3078_v1 = vpop.f32.mrf.mxu1 }
 0x219   : > { %2235 = vst.msk [vmem:[%s3722_s14 + $0x3a8] sm:$0xff] %vm2117_vm0, %v2106_v62  ;;  %v2105_v2 = vadd.f32 %v3715_v40, %v1929_v63  ;;  %v1944_v3 = vadd.f32 %v3078_v1, %v2854_v0  ;;  %v1233_v4 = vpop.f32.mrf.mxu0 }
 0x21a   : > { %v1938_v5 = vpop.f32.mrf.mxu1 }
 0x21b   : > { %2234 = vst.msk [vmem:[%s3722_s14 + $0x3a0] sm:$0xff] %vm2117_vm0, %v2105_v2  ;;  %v2108_v6 = vadd.f32 %v3715_v40, %v1944_v3  ;;  %v1939_v7 = vadd.f32 %v1938_v5, %v1233_v4  ;;  %v2857_v8 = vpop.f32.mrf.mxu0 }
 0x21c   : > { %v3081_v9 = vpop.f32.mrf.mxu1 }
 0x21d   : > { %2237 = vst.msk [vmem:[%s3722_s14 + $0x3b8] sm:$0xff] %vm2117_vm0, %v2108_v6  ;;  %v2107_v10 = vadd.f32 %v3715_v40, %v1939_v7  ;;  %v1954_v11 = vadd.f32 %v3081_v9, %v2857_v8  ;;  %v1243_v12 = vpop.f32.mrf.mxu0 }
 0x21e   : > { %v1948_v13 = vpop.f32.mrf.mxu1 }
 0x21f   : > { %2236 = vst.msk [vmem:[%s3722_s14 + $0x3b0] sm:$0xff] %vm2117_vm0, %v2107_v10  ;;  %v2110_v14 = vadd.f32 %v3715_v40, %v1954_v11  ;;  %v1949_v15 = vadd.f32 %v1948_v13, %v1243_v12  ;;  %v2860_v16 = vpop.f32.mrf.mxu0 }
 0x220   : > { %v3084_v17 = vpop.f32.mrf.mxu1 }
 0x221   : > { %2239 = vst.msk [vmem:[%s3722_s14 + $0x3c8] sm:$0xff] %vm2117_vm0, %v2110_v14  ;;  %v2109_v18 = vadd.f32 %v3715_v40, %v1949_v15  ;;  %v1964_v19 = vadd.f32 %v3084_v17, %v2860_v16  ;;  %v1253_v20 = vpop.f32.mrf.mxu0 }
 0x222   : > { %v1958_v21 = vpop.f32.mrf.mxu1 }
 0x223   : > { %2238 = vst.msk [vmem:[%s3722_s14 + $0x3c0] sm:$0xff] %vm2117_vm0, %v2109_v18  ;;  %v2112_v22 = vadd.f32 %v3715_v40, %v1964_v19  ;;  %v1959_v23 = vadd.f32 %v1958_v21, %v1253_v20  ;;  %v2863_v24 = vpop.f32.mrf.mxu0 }
 0x224   : > { %v3087_v25 = vpop.f32.mrf.mxu1 }
 0x225   : > { %2241 = vst.msk [vmem:[%s3722_s14 + $0x3d8] sm:$0xff] %vm2117_vm0, %v2112_v22  ;;  %v2111_v26 = vadd.f32 %v3715_v40, %v1959_v23  ;;  %v1974_v27 = vadd.f32 %v3087_v25, %v2863_v24  ;;  %v1263_v28 = vpop.f32.mrf.mxu0 }
 0x226   : > { %v1968_v29 = vpop.f32.mrf.mxu1 }
 0x227   : > { %2240 = vst.msk [vmem:[%s3722_s14 + $0x3d0] sm:$0xff] %vm2117_vm0, %v2111_v26  ;;  %v2114_v30 = vadd.f32 %v3715_v40, %v1974_v27  ;;  %v1969_v31 = vadd.f32 %v1968_v29, %v1263_v28  ;;  %v2866_v32 = vpop.f32.mrf.mxu0 }
 0x228   : > { %v3090_v33 = vpop.f32.mrf.mxu1 }
 0x229   : > { %2243 = vst.msk [vmem:[%s3722_s14 + $0x3e8] sm:$0xff] %vm2117_vm0, %v2114_v30  ;;  %v2113_v34 = vadd.f32 %v3715_v40, %v1969_v31  ;;  %v1984_v35 = vadd.f32 %v3090_v33, %v2866_v32  ;;  %v1273_v36 = vpop.f32.mrf.mxu0 }
 0x22a   : > { %v1978_v37 = vpop.f32.mrf.mxu1 }
 0x22b   : > { %2242 = vst.msk [vmem:[%s3722_s14 + $0x3e0] sm:$0xff] %vm2117_vm0, %v2113_v34  ;;  %v2116_v38 = vadd.f32 %v3715_v40, %v1984_v35  ;;  %v1979_v39 = vadd.f32 %v1978_v37, %v1273_v36 }
 0x22d   : > { %2245 = vst.msk [vmem:[%s3722_s14 + $0x3f8] sm:$0xff] %vm2117_vm0, %v2116_v38  ;;  %v2115_v41 = vadd.f32 %v3715_v40, %v1979_v39 }
 0x22f   : > { %2244 = vst.msk [vmem:[%s3722_s14 + $0x3f0] sm:$0xff] %vm2117_vm0, %v2115_v41 }
 0x230 PF: > { %p19_p11 = scmp.ge.s32.totalorder %s3290_s24, 4   ;;  %s4189_s20 = smov %s3223_s21 }
 0x231   : > { %s4190_s21 = smov %s3227_s22  ;;  %s4191_s22 = smov %s3300_s27 }
 0x232   : > { %s4192_s23 = smov %s3290_s24  ;;  %21 = sbr.rel (!%p19_p11) target bundleno = 7 (0x7), region = 93 }
 0x237   :  { %2268 = vsyncpa [#allocation4], 1 }
 0x238   :  { %2270 = vsyncpa [#allocation4 + $0x1], 1 }
 0x239   :  { %2271 = vsyncpa [#allocation6], 1 }
 0x23a   :  { %2273 = vsyncpa [#allocation6 + $0x1], 1 }

</bundles_post_ra>
